<compile_context>
chip_gen: v7x
topology: tpu7x:2x2x1
jax: 0.10.0
libtpu: 0.0.40
codegen_flags: <defaults>
</compile_context>

<pallas_src>
import jax
import jax.numpy as jnp
from jax.experimental import pallas as pl
from jax.experimental.pallas import tpu as pltpu


_MAX_TPB = 32              # max taus fused per grid step
_SW_BATCH_THRESHOLD = 64   # batches >= this use the S @ W reformulation


def _select_tpb(B):
    """Taus per grid step.

    B <= 8: single grid step, TPB=B, zero padding (latency path).
    Otherwise: multiple of 8 (sublane tile), capped at _MAX_TPB and at ~B//2 so the
    "parallel" grid axis has >= 2 steps (v7x megacore sharding).
    """
    if B <= 8:
        return B
    return min(_MAX_TPB, max(8, ((B // 2) // 8) * 8))


def _koopman_scaled_matmul_kernel(tau_ref, lam_ref, vinv_ref, v_ref, k_ref):
    # tau_ref : VMEM (TPB, 1)     taus of this grid step
    # lam_ref : VMEM (1, D)       Lambda row (resident: constant index_map)
    # vinv_ref: VMEM (D, D)       V^{-1}     (resident)
    # v_ref   : VMEM (D, D)       V          (resident)
    # k_ref   : VMEM (TPB*D, D)   lane-dense output slab
    tpb = tau_ref.shape[0]
    d = vinv_ref.shape[0]
    vinv = vinv_ref[...]
    v = v_ref[...]
    scale = jnp.exp(tau_ref[...] * lam_ref[...])          # (TPB, D)  -> EUP exp
    # Unrolled per-tau: one VPU column scaling of V^{-1} (only ONE (D,D) slab live
    # at a time -> no spills, no concat staging), result streamed straight into the
    # output slab slice (static offsets, unmasked vst).
    for t in range(tpb):
        lhs_t = vinv * scale[t:t + 1, :]                   # (D, D)
        k_ref[pl.ds(t * d, d), :] = jnp.dot(
            lhs_t, v,
            preferred_element_type=jnp.float32,
            precision=jax.lax.Precision.HIGHEST)


def _koopman_sw_kernel(tau_ref, lam_ref, w_ref, k_ref):
    # tau_ref: VMEM (TPB, 1); lam_ref: VMEM (1, D)
    # w_ref  : VMEM (D, D*D)  W[k, i*D+j] = Vinv[i,k]*V[k,j]  (resident)
    # k_ref  : VMEM (TPB, D*D) flattened Koopman operators for this step
    s = jnp.exp(tau_ref[...] * lam_ref[...])               # (TPB, D)
    k_ref[...] = jnp.dot(
        s, w_ref[...],
        preferred_element_type=jnp.float32,
        precision=jax.lax.Precision.HIGHEST)


def koopman_forward_batched(taus, V, Lambda, Vinv=None, W=None):
    """Batched Koopman operator.

    taus: (B,) f32; V: (D, D); Lambda: (D,).  Optional precomputed Vinv (hoist it!)
    and, for the large-batch path, a precomputed W (depends only on V).
    Returns K: (B, D, D) f32 with K[b] = V^{-1} @ diag(exp(taus[b]*Lambda)) @ V.
    """
    V = V.astype(jnp.float32)
    Lambda = jnp.asarray(Lambda, jnp.float32)
    taus = jnp.asarray(taus, jnp.float32).reshape(-1)
    B = taus.shape[0]
    D = V.shape[0]

    if Vinv is None:
        # TODO(synk): torch.inverse has no Pallas equivalent; computed once per V in
        # JAX glue (independent of tau) — callers should precompute and reuse it.
        Vinv = jnp.linalg.inv(V)
    Vinv = Vinv.astype(jnp.float32)

    TPB = _select_tpb(B)
    Bp = ((B + TPB - 1) // TPB) * TPB
    taus_p = jnp.pad(taus, (0, Bp - B)) if Bp != B else taus
    tau_col = taus_p.reshape(Bp, 1)
    lam_row = Lambda.reshape(1, D)
    grid = (Bp // TPB,)

    if B >= _SW_BATCH_THRESHOLD:
        # Large batch: K_flat = S @ W, S[b,k] = exp(tau_b*Lambda_k),
        # W[k, i*D+j] = Vinv[i,k]*V[k,j] (once per V, VMEM-resident).  One
        # (TPB, D) @ (D, D*D) MXU matmul per step; 16384-lane-wide output.
        if W is None:
            W = (Vinv.T[:, :, None] * V[:, None, :]).reshape(D, D * D)
        W = W.astype(jnp.float32)

        cost = pl.CostEstimate(
            flops=2 * Bp * D * D * D,
            transcendentals=Bp * D,
            bytes_accessed=4 * (D * D * D + Bp * D * D + Bp + D),
        )
        out = pl.pallas_call(
            _koopman_sw_kernel,
            out_shape=jax.ShapeDtypeStruct((Bp, D * D), jnp.float32),
            grid=grid,
            in_specs=[
                pl.BlockSpec((TPB, 1), lambda b: (b, 0)),      # taus of this block
                pl.BlockSpec((1, D), lambda b: (0, 0)),        # Lambda (resident)
                # NOTE: resident W still gets default double-buffering (2 x 8 MiB at
                # D=128).  If D grows, add pipeline_mode=pl.Buffered(1) here and tile
                # W's columns over a second grid axis (size against v7x's 64 MiB).
                pl.BlockSpec((D, D * D), lambda b: (0, 0)),    # W (resident)
            ],
            out_specs=pl.BlockSpec((TPB, D * D), lambda b: (b, 0)),
            compiler_params=pltpu.CompilerParams(
                dimension_semantics=("parallel",),
                vmem_limit_bytes=48 << 20),
            cost_estimate=cost,
        )(tau_col, lam_row, W)
        return out.reshape(Bp, D, D)[:B]

    # Small / moderate batch: per-tau column scaling of resident V^{-1} + direct
    # (D,D)@(D,D) MXU matmuls written straight into the lane-dense output slab.
    cost = pl.CostEstimate(
        flops=2 * Bp * D * D * D,
        transcendentals=Bp * D,
        bytes_accessed=4 * (3 * D * D + Bp * D * D + Bp + D),
    )
    out = pl.pallas_call(
        _koopman_scaled_matmul_kernel,
        out_shape=jax.ShapeDtypeStruct((Bp * D, D), jnp.float32),
        grid=grid,
        in_specs=[
            pl.BlockSpec((TPB, 1), lambda b: (b, 0)),          # taus of this block
            pl.BlockSpec((1, D), lambda b: (0, 0)),            # Lambda (resident)
            pl.BlockSpec((D, D), lambda b: (0, 0)),            # V^{-1}  (resident)
            pl.BlockSpec((D, D), lambda b: (0, 0)),            # V       (resident)
        ],
        out_specs=pl.BlockSpec((TPB * D, D), lambda b: (b, 0)),
        compiler_params=pltpu.CompilerParams(
            dimension_semantics=("parallel",),
            vmem_limit_bytes=32 << 20),
        cost_estimate=cost,
    )(tau_col, lam_row, Vinv, V)
    return out.reshape(Bp, D, D)[:B]


def koopman_forward(tau, V, Lambda, Vinv=None):
    """Original module semantics: scalar tau -> (D, D) Koopman operator K."""
    return koopman_forward_batched(
        jnp.asarray(tau, jnp.float32).reshape(1), V, Lambda, Vinv=Vinv)[0]


if __name__ == "__main__":
    koopman_dim = 128   # lane-aligned (last dim = 128), tiny for VMEM

    key = jax.random.PRNGKey(0)
    kV, kL = jax.random.split(key)
    # matches torch.nn.init.normal_(mean=0, std=0.1)
    V = 0.1 * jax.random.normal(kV, (koopman_dim, koopman_dim), dtype=jnp.float32)
    Lambda = 0.1 * jax.random.normal(kL, (koopman_dim,), dtype=jnp.float32)

    # Hoisted once per V (independent of tau) and reused for every call below.
    Vinv = jnp.linalg.inv(V)

    # Pure-JAX reference
    def ref_one(t):
        scaled = Vinv * jnp.exp(t * Lambda)[None, :]       # == Vinv @ diag(exp(t*L))
        return jnp.dot(scaled, V, precision=jax.lax.Precision.HIGHEST)

    # 1) Small batched rollout (per-tau scaled-matmul path, TPB=B, no padding).
    taus = jnp.linspace(0.1, 1.0, 4, dtype=jnp.float32)
    K_batch = jax.block_until_ready(
        koopman_forward_batched(taus, V, Lambda, Vinv=Vinv))
    K_batch_ref = jax.vmap(ref_one)(taus)

    # 2) Original single-tau module semantics (TPB=1, no padded blocks written).
    tau0 = 0.5
    K_single = jax.block_until_ready(
        koopman_forward(tau0, V, Lambda, Vinv=Vinv))
    K_single_ref = ref_one(jnp.float32(tau0))

    # 3) Large batch -> S @ W reformulation path (lane-dense single-matmul kernel).
    taus_big = jnp.linspace(0.05, 2.0, 160, dtype=jnp.float32)
    K_big = jax.block_until_ready(
        koopman_forward_batched(taus_big, V, Lambda, Vinv=Vinv))
    K_big_ref = jax.vmap(ref_one)(taus_big)

    assert K_batch.shape == (4, koopman_dim, koopman_dim)
    assert K_single.shape == (koopman_dim, koopman_dim)
    assert K_big.shape == (160, koopman_dim, koopman_dim)
    assert jnp.allclose(K_batch, K_batch_ref, atol=1e-4, rtol=1e-4), (
        float(jnp.max(jnp.abs(K_batch - K_batch_ref))))
    assert jnp.allclose(K_single, K_single_ref, atol=1e-4, rtol=1e-4), (
        float(jnp.max(jnp.abs(K_single - K_single_ref))))
    assert jnp.allclose(K_big, K_big_ref, atol=1e-4, rtol=1e-4), (
        float(jnp.max(jnp.abs(K_big - K_big_ref))))

    print("KERNEL_OK")
</pallas_src>

<mosaic_0001>
module attributes {stable_mosaic.version = 11 : i64} {
  func.func @_koopman_scaled_matmul_kernel(%arg0: i32, %arg1: memref<4x1xf32, #tpu.memory_space<vmem>>, %arg2: memref<1x128xf32, #tpu.memory_space<vmem>>, %arg3: memref<128x128xf32, #tpu.memory_space<vmem>>, %arg4: memref<128x128xf32, #tpu.memory_space<vmem>>, %arg5: memref<512x128xf32, #tpu.memory_space<vmem>>) attributes {dimension_semantics = [#tpu.dimension_semantics<parallel>], iteration_bounds = array<i64: 1>, scalar_prefetch = 0 : i64, scratch_operands = 0 : i64, tpu.core_type = #tpu.core_type<tc>, window_params = [{transform_indices = @transform_0, window_bounds = array<i64: 4, 1>}, {pipeline_mode = #tpu.pipeline_mode<synchronous>, transform_indices = @transform_1, window_bounds = array<i64: 1, 128>}, {pipeline_mode = #tpu.pipeline_mode<synchronous>, transform_indices = @transform_2, window_bounds = array<i64: 128, 128>}, {pipeline_mode = #tpu.pipeline_mode<synchronous>, transform_indices = @transform_3, window_bounds = array<i64: 128, 128>}, {transform_indices = @transform_4, window_bounds = array<i64: 512, 128>}]} {
    %c0 = arith.constant 0 : index
    %c0_0 = arith.constant 0 : index
    %0 = vector.load %arg3[%c0, %c0_0] : memref<128x128xf32, #tpu.memory_space<vmem>>, vector<128x128xf32>
    %c0_1 = arith.constant 0 : index
    %c0_2 = arith.constant 0 : index
    %1 = vector.load %arg4[%c0_1, %c0_2] : memref<128x128xf32, #tpu.memory_space<vmem>>, vector<128x128xf32>
    %c0_3 = arith.constant 0 : index
    %c0_4 = arith.constant 0 : index
    %2 = vector.load %arg1[%c0_3, %c0_4] : memref<4x1xf32, #tpu.memory_space<vmem>>, vector<4x1xf32>
    %c0_5 = arith.constant 0 : index
    %c0_6 = arith.constant 0 : index
    %3 = vector.load %arg2[%c0_5, %c0_6] : memref<1x128xf32, #tpu.memory_space<vmem>>, vector<1x128xf32>
    %4 = vector.broadcast %2 : vector<4x1xf32> to vector<4x128xf32>
    %5 = vector.broadcast %3 : vector<1x128xf32> to vector<4x128xf32>
    %6 = arith.mulf %4, %5 : vector<4x128xf32>
    %7 = math.exp %6 : vector<4x128xf32>
    %8 = vector.extract_strided_slice %7 {offsets = [0, 0], sizes = [1, 128], strides = [1, 1]} : vector<4x128xf32> to vector<1x128xf32>
    %9 = vector.broadcast %8 : vector<1x128xf32> to vector<128x128xf32>
    %10 = arith.mulf %0, %9 : vector<128x128xf32>
    %cst = arith.constant dense<0.000000e+00> : vector<128x128xf32>
    %11 = tpu.matmul %10, %1, %cst {dimension_numbers = #tpu.dot_dimension_numbers<[1], [0], [0], [1], [0, 0, 1, 1], [], []>, precision = #tpu.contract_precision<fp32>} : vector<128x128xf32>, vector<128x128xf32>, vector<128x128xf32> -> vector<128x128xf32>
    %c0_7 = arith.constant 0 : index
    %c0_8 = arith.constant 0 : index
    %12 = vector.load %arg5[%c0_7, %c0_8] : memref<512x128xf32, #tpu.memory_space<vmem>>, vector<128x128xf32>
    tpu.vector_store %arg5[%c0_7, %c0_8], %11 {strides = array<i32>} : memref<512x128xf32, #tpu.memory_space<vmem>>, vector<128x128xf32>,
    %13 = vector.extract_strided_slice %7 {offsets = [1, 0], sizes = [1, 128], strides = [1, 1]} : vector<4x128xf32> to vector<1x128xf32>
    %14 = vector.broadcast %13 : vector<1x128xf32> to vector<128x128xf32>
    %15 = arith.mulf %0, %14 : vector<128x128xf32>
    %cst_9 = arith.constant dense<0.000000e+00> : vector<128x128xf32>
    %16 = tpu.matmul %15, %1, %cst_9 {dimension_numbers = #tpu.dot_dimension_numbers<[1], [0], [0], [1], [0, 0, 1, 1], [], []>, precision = #tpu.contract_precision<fp32>} : vector<128x128xf32>, vector<128x128xf32>, vector<128x128xf32> -> vector<128x128xf32>
    %c128 = arith.constant 128 : index
    %c0_10 = arith.constant 0 : index
    %17 = vector.load %arg5[%c128, %c0_10] : memref<512x128xf32, #tpu.memory_space<vmem>>, vector<128x128xf32>
    tpu.vector_store %arg5[%c128, %c0_10], %16 {strides = array<i32>} : memref<512x128xf32, #tpu.memory_space<vmem>>, vector<128x128xf32>,
    %18 = vector.extract_strided_slice %7 {offsets = [2, 0], sizes = [1, 128], strides = [1, 1]} : vector<4x128xf32> to vector<1x128xf32>
    %19 = vector.broadcast %18 : vector<1x128xf32> to vector<128x128xf32>
    %20 = arith.mulf %0, %19 : vector<128x128xf32>
    %cst_11 = arith.constant dense<0.000000e+00> : vector<128x128xf32>
    %21 = tpu.matmul %20, %1, %cst_11 {dimension_numbers = #tpu.dot_dimension_numbers<[1], [0], [0], [1], [0, 0, 1, 1], [], []>, precision = #tpu.contract_precision<fp32>} : vector<128x128xf32>, vector<128x128xf32>, vector<128x128xf32> -> vector<128x128xf32>
    %c256 = arith.constant 256 : index
    %c0_12 = arith.constant 0 : index
    %22 = vector.load %arg5[%c256, %c0_12] : memref<512x128xf32, #tpu.memory_space<vmem>>, vector<128x128xf32>
    tpu.vector_store %arg5[%c256, %c0_12], %21 {strides = array<i32>} : memref<512x128xf32, #tpu.memory_space<vmem>>, vector<128x128xf32>,
    %23 = vector.extract_strided_slice %7 {offsets = [3, 0], sizes = [1, 128], strides = [1, 1]} : vector<4x128xf32> to vector<1x128xf32>
    %24 = vector.broadcast %23 : vector<1x128xf32> to vector<128x128xf32>
    %25 = arith.mulf %0, %24 : vector<128x128xf32>
    %cst_13 = arith.constant dense<0.000000e+00> : vector<128x128xf32>
    %26 = tpu.matmul %25, %1, %cst_13 {dimension_numbers = #tpu.dot_dimension_numbers<[1], [0], [0], [1], [0, 0, 1, 1], [], []>, precision = #tpu.contract_precision<fp32>} : vector<128x128xf32>, vector<128x128xf32>, vector<128x128xf32> -> vector<128x128xf32>
    %c384 = arith.constant 384 : index
    %c0_14 = arith.constant 0 : index
    %27 = vector.load %arg5[%c384, %c0_14] : memref<512x128xf32, #tpu.memory_space<vmem>>, vector<128x128xf32>
    tpu.vector_store %arg5[%c384, %c0_14], %26 {strides = array<i32>} : memref<512x128xf32, #tpu.memory_space<vmem>>, vector<128x128xf32>,
    return
  }
  func.func @transform_0(%arg0: i32) -> (i32, i32) {
    %c0_i32 = arith.constant 0 : i32
    %c0_i32_0 = arith.constant 0 : i32
    return %arg0, %c0_i32 : i32, i32
  }
  func.func @transform_1(%arg0: i32) -> (i32, i32) {
    %c0_i32 = arith.constant 0 : i32
    %c0_i32_0 = arith.constant 0 : i32
    %c0_i32_1 = arith.constant 0 : i32
    return %c0_i32, %c0_i32_0 : i32, i32
  }
  func.func @transform_2(%arg0: i32) -> (i32, i32) {
    %c0_i32 = arith.constant 0 : i32
    %c0_i32_0 = arith.constant 0 : i32
    %c0_i32_1 = arith.constant 0 : i32
    return %c0_i32, %c0_i32_0 : i32, i32
  }
  func.func @transform_3(%arg0: i32) -> (i32, i32) {
    %c0_i32 = arith.constant 0 : i32
    %c0_i32_0 = arith.constant 0 : i32
    %c0_i32_1 = arith.constant 0 : i32
    return %c0_i32, %c0_i32_0 : i32, i32
  }
  func.func @transform_4(%arg0: i32) -> (i32, i32) {
    %c0_i32 = arith.constant 0 : i32
    %c0_i32_0 = arith.constant 0 : i32
    return %arg0, %c0_i32 : i32, i32
  }
}

</mosaic_0001>

<bundles_post_ra>
// kernel: tpu_custom_call.1
= control target key start
LH: loop header
LB: loop body
LE: loop exit
PB: predicated region body
PF: predicated region fallthrough
CT: control target
= control target key end

     0   :  { %9 = vsyncpa [#allocation3], 0  ;;  %s10745_s0 = inlined_call_operand.vmem [shape: f32[4,1], index: 0, kind: input, shape index: {}]   ;;  %s10746_s1 = inlined_call_operand.vmem [shape: f32[1,128], index: 1, kind: input, shape index: {}]   ;;  %s10747_s2 = inlined_call_operand.hbm [shape: f32[128,128], index: 2, kind: input, shape index: {}]   ;;  %s10748_s3 = inlined_call_operand.hbm [shape: f32[128,128], index: 3, kind: input, shape index: {}]   ;;  %s10749_s4 = inlined_call_operand.hbm [shape: f32[512,128], index: 4, kind: output, shape index: {}]  }
   0x1   :  { %10 = vsyncpa [#allocation6], 0 }
   0x2   :  { %11 = vsyncpa [#allocation4], 0  ;;  %s8682_s15 = smov [#allocation2]   ;;  %s8610_s19 = scalar_lea.hbm %s10747_s2, 2048 }
   0x3   :  { %s21_s16 = sshll.u32 %s8682_s15, 4  ;;  %p8611_p0 = scmp.ne.s32.totalorder %s10747_s2, %s8610_s19  ;;  %s22_s16 = int_to_ptr.vmem [resolvable:$true] %s21_s16 }
   0x4   :  { %p8614_p1 = scmp.lt.u32.totalorder %s8610_s19, %s10747_s2 }
   0x6   :  { %p8616_p2 = pnand %p8614_p1, %p8611_p0 }
   0x8   :  { %8619 = shalt.err (!%p8616_p2)
}
   0x9   :  { %s8620_s24 = scalar_lea.vmem %s22_s16, 2048  ;;  %p8625_p4 = scmp.lt.s32.totalorder %s22_s16, %s22_s16 }
   0xa   :  { %p8621_p3 = scmp.ne.s32.totalorder %s22_s16, %s8620_s24  ;;  %p8626_p5 = scmp.lt.s32.totalorder %s8620_s24, %s8620_s24 }
   0xc   :  { %p8627_p6 = por %p8626_p5, %p8625_p4 }
   0xe   :  { %p8628_p7 = pnand %p8627_p6, %p8621_p3 }
  0x10   :  { %8631 = shalt.err (!%p8628_p7)
}
  0x11   :  { %s8683_s25 = smov 128   ;;  %s8684_s26 = smov 8  }
  0x12   :  { %27 = dma.hbm_to_vmem [thread:$0]  %s10747_s2, 2048, %s22_s16, [#allocation3], %s8683_s25, %s8683_s25, %s8684_s26  }
  0x13   :  { %s8685_s29 = smov [#allocation5]   ;;  %s8632_s7 = scalar_lea.hbm %s10748_s3, 2048 }
  0x14   :  { %s33_s30 = sshll.u32 %s8685_s29, 4  ;;  %p8633_p8 = scmp.ne.s32.totalorder %s10748_s3, %s8632_s7  ;;  %s34_s30 = int_to_ptr.vmem [resolvable:$true] %s33_s30 }
  0x15   :  { %p8636_p9 = scmp.lt.u32.totalorder %s8632_s7, %s10748_s3 }
  0x17   :  { %p8638_p10 = pnand %p8636_p9, %p8633_p8 }
  0x19   :  { %8641 = shalt.err (!%p8638_p10)
}
  0x1a   :  { %s8642_s12 = scalar_lea.vmem %s34_s30, 2048  ;;  %p8647_p12 = scmp.lt.s32.totalorder %s34_s30, %s34_s30 }
  0x1b   :  { %p8643_p11 = scmp.ne.s32.totalorder %s34_s30, %s8642_s12  ;;  %p8648_p13 = scmp.lt.s32.totalorder %s8642_s12, %s8642_s12 }
  0x1d   :  { %p8649_p0 = por %p8648_p13, %p8647_p12 }
  0x1f   :  { %p8650_p1 = pnand %p8649_p0, %p8643_p11 }
  0x21   :  { %8653 = shalt.err (!%p8650_p1)
}
  0x22   :  { %39 = dma.hbm_to_vmem [thread:$0]  %s10748_s3, 2048, %s34_s30, [#allocation6], %s8683_s25, %s8683_s25, %s8684_s26  }
  0x23   :  { %8676 = dma.done.wait [#allocation3], 2048  }
  0x24   :  { %8677 = vsyncadd [#allocation3], 4294965248 }
  0x25   :  { %8678 = dma.done.wait [#allocation6], 2048  }
  0x26   :  { %8679 = vsyncadd [#allocation6], 4294965248  ;;  %v8686_v0 = vmov 0   ;;  %v78_v1 = vld [vmem:[%s10745_s0] sm:$0xf]  ;;  %v62_v2 = vld [vmem:[#allocation5] sm:$0xff] }
  0x27   :  { %8607 = vset.pattern.permute.xlu0 %v8686_v0  ;;  %v63_v3 = vld [vmem:[#allocation5 + $0x8] sm:$0xff]  ;;  %v115_v4 = vand.u32 4294901760, %v62_v2  ;;  %v8746_v6 = vld [vmem:[#allocation5 + $0x10] sm:$0xff]  ;;  %v8748_v7 = vld [vmem:[#allocation5 + $0x18] sm:$0xff] }
  0x28   :  { %82 = vperm.xlu0 %8607, %v78_v1   ;;  %v118_v5 = vand.u32 4294901760, %v63_v3  ;;  %v121_v8 = vand.u32 4294901760, %v8746_v6  ;;  %v124_v9 = vand.u32 4294901760, %v8748_v7  ;;  %v8752_v10 = vld [vmem:[#allocation5 + $0x20] sm:$0xff]  ;;  %v8754_v11 = vld [vmem:[#allocation5 + $0x28] sm:$0xff]  ;;  %v8770_v16 = vld [vmem:[#allocation5 + $0x30] sm:$0xff] }
  0x29   :  { %v127_v13 = vand.u32 4294901760, %v8752_v10  ;;  %v130_v14 = vand.u32 4294901760, %v8754_v11  ;;  %v8772_v17 = vld [vmem:[#allocation5 + $0x38] sm:$0xff]  ;;  %v133_v19 = vand.u32 4294901760, %v8770_v16  ;;  %v8786_v21 = vld [vmem:[#allocation5 + $0x40] sm:$0xff]  ;;  %v8788_v22 = vld [vmem:[#allocation5 + $0x48] sm:$0xff]  ;;  %v8836_v38 = vsub.f32 %v62_v2, %v115_v4 }
  0x2a   :  { %v8756_v12 = vpack.c.bf16 %v118_v5, %v115_v4  ;;  %v8764_v15 = vpack.c.bf16 %v124_v9, %v121_v8  ;;  %v136_v20 = vand.u32 4294901760, %v8772_v17  ;;  %v139_v24 = vand.u32 4294901760, %v8786_v21  ;;  %v8802_v26 = vld [vmem:[#allocation5 + $0x50] sm:$0xff]  ;;  %v8804_v27 = vld [vmem:[#allocation5 + $0x58] sm:$0xff]  ;;  %v8816_v31 = vld [vmem:[#allocation5 + $0x60] sm:$0xff] }
  0x2b   :  { %v8780_v18 = vpack.c.bf16 %v130_v14, %v127_v13  ;;  %v142_v25 = vand.u32 4294901760, %v8788_v22  ;;  %v145_v29 = vand.u32 4294901760, %v8802_v26  ;;  %v148_v30 = vand.u32 4294901760, %v8804_v27  ;;  %v8818_v32 = vld [vmem:[#allocation5 + $0x68] sm:$0xff]  ;;  %v8832_v36 = vld [vmem:[#allocation5 + $0x70] sm:$0xff]  ;;  %v8834_v37 = vld [vmem:[#allocation5 + $0x78] sm:$0xff] }
  0x2c   :  { %11063 = vst [vmem:[#allocation11_spill] sm:$0xff] %v8756_v12  ;;  %11064 = vst [vmem:[#allocation12_spill] sm:$0xff] %v8764_v15  ;;  %7514 = vmatprep.subr.bf16.mxu0 %v8756_v12  ;;  %7706 = vmatprep.subr.bf16.mxu1 %v8756_v12  ;;  %v8796_v23 = vpack.c.bf16 %v136_v20, %v133_v19  ;;  %v151_v34 = vand.u32 4294901760, %v8816_v31  ;;  %v154_v35 = vand.u32 4294901760, %v8818_v32  ;;  %v157_v40 = vand.u32 4294901760, %v8832_v36 }
  0x2d   :  { %7516 = vmatpush3.bf16.msra.mxu0 %v8756_v12  ;;  %7708 = vmatpush3.bf16.msra.mxu1 %v8756_v12  ;;  %11065 = vst [vmem:[#allocation13_spill] sm:$0xff] %v8780_v18  ;;  %v8812_v28 = vpack.c.bf16 %v142_v25, %v139_v24  ;;  %v8828_v33 = vpack.c.bf16 %v148_v30, %v145_v29  ;;  %11069 = vst [vmem:[#allocation17_spill] sm:$0xff] %v8836_v38  ;;  %v160_v42 = vand.u32 4294901760, %v8834_v37  ;;  %v9259_v12 = vld [vmem:[#allocation2 + $0x48] sm:$0xff] }
  0x2e   :  { %7518 = vmatprep.subr.bf16.mxu0 %v8764_v15  ;;  %7710 = vmatprep.subr.bf16.mxu1 %v8764_v15  ;;  %11066 = vst [vmem:[#allocation14_spill] sm:$0xff] %v8796_v23  ;;  %v8838_v39 = vsub.f32 %v63_v3, %v118_v5  ;;  %v8849_v41 = vpack.c.bf16 %v154_v35, %v151_v34  ;;  %v10765_v43 = vand.u32 4294901760, %v8836_v38 }
  0x2f   :  { %11067 = vst [vmem:[#allocation15_spill] sm:$0xff] %v8812_v28  ;;  %11068 = vst [vmem:[#allocation16_spill] sm:$0xff] %v8828_v33  ;;  %v8865_v47 = vsub.f32 %v8746_v6, %v121_v8  ;;  %v8870_v48 = vsub.f32 %v8748_v7, %v124_v9  ;;  %v8878_v49 = vpack.c.bf16 %v160_v42, %v157_v40 }
  0x30   :  { %11070 = vst [vmem:[#allocation18_spill] sm:$0xff] %v8838_v39  ;;  %11071 = vst [vmem:[#allocation19_spill] sm:$0xff] %v8849_v41  ;;  %v10764_v44 = vand.u32 4294901760, %v8838_v39  ;;  %v359_v45 = vsub.f32 %v8836_v38, %v10765_v43  ;;  %v8903_v60 = vsub.f32 %v8752_v10, %v127_v13  ;;  %v8908_v61 = vsub.f32 %v8754_v11, %v130_v14 }
  0x31   :  { %7520 = vmatpush3.bf16.msra.mxu0 %v8764_v15  ;;  %7712 = vmatpush3.bf16.msra.mxu1 %v8764_v15  ;;  %11072 = vst [vmem:[#allocation20_spill] sm:$0xff] %v8865_v47  ;;  %11073 = vst [vmem:[#allocation21_spill] sm:$0xff] %v8870_v48  ;;  %v10763_v52 = vand.u32 4294901760, %v8865_v47  ;;  %v10762_v53 = vand.u32 4294901760, %v8870_v48  ;;  %v8915_v0 = vsub.f32 %v8770_v16, %v133_v19 }
  0x32   :  { %7522 = vmatprep.subr.bf16.mxu0 %v8780_v18  ;;  %7714 = vmatprep.subr.bf16.mxu1 %v8780_v18  ;;  %v366_v46 = vsub.f32 %v8838_v39, %v10764_v44  ;;  %11074 = vst [vmem:[#allocation22_spill] sm:$0xff] %v8878_v49  ;;  %v360_v50 = vand.u32 4294901760, %v359_v45  ;;  %11077 = vst [vmem:[#allocation25_spill] sm:$0xff] %v8903_v60  ;;  %v10761_v62 = vand.u32 4294901760, %v8903_v60  ;;  %v10760_v63 = vand.u32 4294901760, %v8908_v61 }
  0x33   :  { %v373_v54 = vsub.f32 %v8865_v47, %v10763_v52  ;;  %v380_v55 = vsub.f32 %v8870_v48, %v10762_v53  ;;  %11078 = vst [vmem:[#allocation26_spill] sm:$0xff] %v8908_v61  ;;  %11079 = vst [vmem:[#allocation27_spill] sm:$0xff] %v8915_v0  ;;  %v8920_v1 = vsub.f32 %v8772_v17, %v136_v20  ;;  %v10759_v4 = vand.u32 4294901760, %v8915_v0 }
  0x34   :  { %v367_v51 = vand.u32 4294901760, %v366_v46  ;;  %v387_v2 = vsub.f32 %v8903_v60, %v10761_v62  ;;  %v394_v3 = vsub.f32 %v8908_v61, %v10760_v63  ;;  %v8943_v16 = vsub.f32 %v8786_v21, %v139_v24 }
  0x35   :  { %7524 = vmatpush3.bf16.msra.mxu0 %v8780_v18  ;;  %7716 = vmatpush3.bf16.msra.mxu1 %v8780_v18  ;;  %v374_v57 = vand.u32 4294901760, %v373_v54  ;;  %v381_v58 = vand.u32 4294901760, %v380_v55  ;;  %11080 = vst [vmem:[#allocation28_spill] sm:$0xff] %v8920_v1  ;;  %v10758_v5 = vand.u32 4294901760, %v8920_v1  ;;  %v401_v8 = vsub.f32 %v8915_v0, %v10759_v4 }
  0x36   :  { %7526 = vmatprep.subr.bf16.mxu0 %v8796_v23  ;;  %7718 = vmatprep.subr.bf16.mxu1 %v8796_v23  ;;  %v8892_v56 = vpack.c.bf16 %v367_v51, %v360_v50  ;;  %v388_v6 = vand.u32 4294901760, %v387_v2  ;;  %v395_v7 = vand.u32 4294901760, %v394_v3  ;;  %11083 = vst [vmem:[#allocation31_spill] sm:$0xff] %v8943_v16  ;;  %v8948_v17 = vsub.f32 %v8788_v22, %v142_v25 }
  0x37   :  { %v8896_v59 = vpack.c.bf16 %v381_v58, %v374_v57  ;;  %v408_v9 = vsub.f32 %v8920_v1, %v10758_v5  ;;  %v402_v11 = vand.u32 4294901760, %v401_v8  ;;  %v10757_v19 = vand.u32 4294901760, %v8943_v16 }
  0x38   :  { %11075 = vst [vmem:[#allocation23_spill] sm:$0xff] %v8892_v56  ;;  %v8936_v10 = vpack.c.bf16 %v395_v7, %v388_v6  ;;  %11084 = vst [vmem:[#allocation32_spill] sm:$0xff] %v8948_v17  ;;  %v10756_v20 = vand.u32 4294901760, %v8948_v17  ;;  %v8955_v45 = vsub.f32 %v8802_v26, %v145_v29  ;;  %v8960_v46 = vsub.f32 %v8804_v27, %v148_v30 }
  0x39   :  { %7528 = vmatpush3.bf16.msra.mxu0 %v8796_v23  ;;  %7720 = vmatpush3.bf16.msra.mxu1 %v8796_v23  ;;  %11076 = vst [vmem:[#allocation24_spill] sm:$0xff] %v8896_v59  ;;  %v409_v13 = vand.u32 4294901760, %v408_v9  ;;  %v415_v21 = vsub.f32 %v8943_v16, %v10757_v19  ;;  %v8983_v57 = vsub.f32 %v8816_v31, %v151_v34 }
  0x3a   :  { %7530 = vmatprep.subr.bf16.mxu0 %v8812_v28  ;;  %7722 = vmatprep.subr.bf16.mxu1 %v8812_v28  ;;  %11081 = vst [vmem:[#allocation29_spill] sm:$0xff] %v8936_v10  ;;  %11085 = vst [vmem:[#allocation33_spill] sm:$0xff] %v8955_v45  ;;  %v422_v22 = vsub.f32 %v8948_v17, %v10756_v20  ;;  %v10755_v24 = vand.u32 4294901760, %v8955_v45  ;;  %v10754_v25 = vand.u32 4294901760, %v8960_v46 }
  0x3b   :  { %v8938_v14 = vpack.c.bf16 %v409_v13, %v402_v11  ;;  %11086 = vst [vmem:[#allocation34_spill] sm:$0xff] %v8960_v46  ;;  %v416_v50 = vand.u32 4294901760, %v415_v21  ;;  %11089 = vst [vmem:[#allocation37_spill] sm:$0xff] %v8983_v57  ;;  %v8988_v58 = vsub.f32 %v8818_v32, %v154_v35  ;;  %v10753_v2 = vand.u32 4294901760, %v8983_v57 }
  0x3c   :  { %v423_v26 = vand.u32 4294901760, %v422_v22  ;;  %v429_v29 = vsub.f32 %v8955_v45, %v10755_v24  ;;  %v436_v27 = vsub.f32 %v8960_v46, %v10754_v25  ;;  %v8995_v6 = vsub.f32 %v8832_v36, %v157_v40  ;;  %v9057_v25 = vld [vmem:[#allocation2 + $0x8] sm:$0xff] }
  0x3d   :  { %7532 = vmatpush3.bf16.msra.mxu0 %v8812_v28  ;;  %7724 = vmatpush3.bf16.msra.mxu1 %v8812_v28  ;;  %11082 = vst [vmem:[#allocation30_spill] sm:$0xff] %v8938_v14  ;;  %11090 = vst [vmem:[#allocation38_spill] sm:$0xff] %v8988_v58  ;;  %v10752_v3 = vand.u32 4294901760, %v8988_v58  ;;  %v9000_v7 = vsub.f32 %v8834_v37, %v160_v42  ;;  %v443_v31 = vsub.f32 %v8983_v57, %v10753_v2  ;;  %v9055_v2 = vld [vmem:[#allocation2] sm:$0xff]  ;;  %v9165_v28 = vld [vmem:[#allocation2 + $0x38] sm:$0xff] }
  0x3e   :  { %7534 = vmatprep.subr.bf16.mxu0 %v8828_v33  ;;  %7726 = vmatprep.subr.bf16.mxu1 %v8828_v33  ;;  %v8976_v30 = vpack.c.bf16 %v423_v26, %v416_v50  ;;  %v430_v51 = vand.u32 4294901760, %v429_v29  ;;  %v437_v54 = vand.u32 4294901760, %v436_v27  ;;  %11091 = vst [vmem:[#allocation39_spill] sm:$0xff] %v8995_v6  ;;  %v10751_v34 = vand.u32 4294901760, %v8995_v6 }
  0x3f   :  { %11092 = vst [vmem:[#allocation40_spill] sm:$0xff] %v9000_v7  ;;  %v450_v32 = vsub.f32 %v8988_v58, %v10752_v3  ;;  %v10750_v35 = vand.u32 4294901760, %v9000_v7  ;;  %v444_v8 = vand.u32 4294901760, %v443_v31  ;;  %v9018_v42 = vpack.c.bf16 %v8838_v39, %v8836_v38  ;;  %v5400_v31 = vld [vmem:[%s10746_s1] ss:$0 sm:$0xff]  ;;  %v9161_v39 = vld [vmem:[#allocation2 + $0x28] sm:$0xff] }
  0x40   :  { %11087 = vst [vmem:[#allocation35_spill] sm:$0xff] %v8976_v30  ;;  %v8978_v55 = vpack.c.bf16 %v437_v54, %v430_v51  ;;  %v457_v40 = vsub.f32 %v8995_v6, %v10751_v34  ;;  %v9026_v22 = vpack.c.bf16 %v8870_v48, %v8865_v47  ;;  %v9030_v50 = vpack.c.bf16 %v8908_v61, %v8903_v60  ;;  %v9159_v47 = vld [vmem:[#allocation2 + $0x20] sm:$0xff]  ;;  %s8687_s1 = smov [#allocation7]  }
  0x41   :  { %7536 = vmatpush3.bf16.msra.mxu0 %v8828_v33  ;;  %7728 = vmatpush3.bf16.msra.mxu1 %v8828_v33  ;;  %v451_v36 = vand.u32 4294901760, %v450_v32  ;;  %v464_v37 = vsub.f32 %v9000_v7, %v10750_v35  ;;  %11093 = vst [vmem:[#allocation41_spill] sm:$0xff] %v9018_v42  ;;  %v9034_v26 = vpack.c.bf16 %v8920_v1, %v8915_v0  ;;  %s5387_s16 = sshll.u32 %s8687_s1, 4  ;;  %s5388_s16 = int_to_ptr.vmem [resolvable:$true] %s5387_s16 }
  0x42   :  { %7538 = vmatprep.subr.bf16.mxu0 %v8849_v41  ;;  %7730 = vmatprep.subr.bf16.mxu1 %v8849_v41  ;;  %11088 = vst [vmem:[#allocation36_spill] sm:$0xff] %v8978_v55  ;;  %v458_v11 = vand.u32 4294901760, %v457_v40  ;;  %11096 = vst [vmem:[#allocation44_spill] sm:$0xff] %v9026_v22  ;;  %v9038_v29 = vpack.c.bf16 %v8948_v17, %v8943_v16  ;;  %v9042_v27 = vpack.c.bf16 %v8960_v46, %v8955_v45  ;;  %v94_v40 = vlaneseq  ;;  %s8654_s17 = scalar_lea.vmem %s5388_s16, 8192  ;;  %p8659_p3 = scmp.lt.s32.totalorder %s5388_s16, %s5388_s16 }
  0x43   :  { %v9020_v9 = vpack.c.bf16 %v451_v36, %v444_v8  ;;  %v465_v13 = vand.u32 4294901760, %v464_v37  ;;  %11097 = vst [vmem:[#allocation45_spill] sm:$0xff] %v9030_v50  ;;  %11098 = vst [vmem:[#allocation46_spill] sm:$0xff] %v9034_v26  ;;  %v9046_v51 = vpack.c.bf16 %v8988_v58, %v8983_v57  ;;  %v9050_v54 = vpack.c.bf16 %v9000_v7, %v8995_v6  ;;  %p8655_p2 = scmp.ne.s32.totalorder %s5388_s16, %s8654_s17  ;;  %p8660_p4 = scmp.lt.s32.totalorder %s8654_s17, %s8654_s17 }
  0x44   :  { %11099 = vst [vmem:[#allocation47_spill] sm:$0xff] %v9038_v29  ;;  %11100 = vst [vmem:[#allocation48_spill] sm:$0xff] %v9042_v27  ;;  %v95_v37 = vshrl.u32 %v94_v40, 7 }
  0x45   :  { %7540 = vmatpush3.bf16.msra.mxu0 %v8849_v41  ;;  %7732 = vmatpush3.bf16.msra.mxu1 %v8849_v41  ;;  %11094 = vst [vmem:[#allocation42_spill] sm:$0xff] %v9020_v9  ;;  %v9022_v21 = vpack.c.bf16 %v465_v13, %v458_v11  ;;  %11101 = vst [vmem:[#allocation49_spill] sm:$0xff] %v9046_v51  ;;  %v9163_v41 = vld [vmem:[#allocation2 + $0x30] sm:$0xff]  ;;  %p8661_p5 = por %p8660_p4, %p8659_p3 }
  0x46   :  { %7542 = vmatprep.subr.bf16.mxu0 %v8878_v49  ;;  %7734 = vmatprep.subr.bf16.mxu1 %v8878_v49  ;;  %11102 = vst [vmem:[#allocation50_spill] sm:$0xff] %v9050_v54  ;;  %v96_v11 = vsub.s32 0, %v95_v37  ;;  %v1418_v13 = vsub.s32 1, %v95_v37  ;;  %v2740_v35 = vsub.s32 2, %v95_v37  ;;  %v4062_v34 = vsub.s32 3, %v95_v37 }
  0x47   :  { %11095 = vst [vmem:[#allocation43_spill] sm:$0xff] %v9022_v21  ;;  %p8662_p6 = pnand %p8661_p5, %p8655_p2 }
  0x49   :  { %7544 = vmatpush3.bf16.msra.mxu0 %v8878_v49  ;;  %7736 = vmatpush3.bf16.msra.mxu1 %v8878_v49 }
  0x4a   :  { %7546 = vmatprep.subr.bf16.mxu0 %v8892_v56  ;;  %7738 = vmatprep.subr.bf16.mxu1 %v8892_v56 }
  0xa7   :  { %v83_v32 = vpop.permute.xlu0 %82 }
  0xa8   :  { %v91_v8 = vmul.f32 %v5400_v31, %v83_v32  ;;  %v9067_v32 = vld [vmem:[#allocation2 + $0x10] sm:$0xff] }
  0xaa   :  { %v92_v36 = vmul.f32 1.442695, %v91_v8  ;;  %v9069_v8 = vld [vmem:[#allocation2 + $0x18] sm:$0xff] }
  0xac   :  { %8608 = vpow2.f32 %v92_v36 }
  0xb6   :  { %v8609_v3 = vpop.eup %8608 }
  0xb7   :  { %v9059_v24 = vrot.slane %v8609_v3, %v96_v11  ;;  %v9061_v20 = vrot.slane %v8609_v3, %v1418_v13  ;;  %v9063_v19 = vrot.slane %v8609_v3, %v2740_v35  ;;  %v9065_v31 = vrot.slane %v8609_v3, %v4062_v34 }
  0xb9   :  { %v98_v36 = vmul.f32 %v9059_v24, %v9055_v2  ;;  %v1420_v40 = vmul.f32 %v9061_v20, %v9055_v2  ;;  %v99_v37 = vmul.f32 %v9059_v24, %v9057_v25  ;;  %v1421_v11 = vmul.f32 %v9061_v20, %v9057_v25 }
  0xba   :  { %v100_v3 = vmul.f32 %v9059_v24, %v9067_v32  ;;  %v1422_v34 = vmul.f32 %v9061_v20, %v9067_v32  ;;  %v101_v35 = vmul.f32 %v9059_v24, %v9069_v8  ;;  %v1423_v13 = vmul.f32 %v9061_v20, %v9069_v8 }
  0xbb   :  { %v9087_v5 = vand.u32 4294901760, %v98_v36  ;;  %v9089_v4 = vand.u32 4294901760, %v1420_v40  ;;  %v9091_v63 = vand.u32 4294901760, %v99_v37  ;;  %v9093_v62 = vand.u32 4294901760, %v1421_v11 }
  0xbc   :  { %v9095_v53 = vand.u32 4294901760, %v100_v3  ;;  %v9097_v52 = vand.u32 4294901760, %v1422_v34  ;;  %v9099_v44 = vand.u32 4294901760, %v101_v35  ;;  %v9101_v43 = vand.u32 4294901760, %v1423_v13 }
  0xbd   :  { %v9104_v7 = vsub.f32 %v98_v36, %v9087_v5  ;;  %v9107_v6 = vsub.f32 %v1420_v40, %v9089_v4  ;;  %v9110_v58 = vsub.f32 %v99_v37, %v9091_v63  ;;  %v9113_v57 = vsub.f32 %v1421_v11, %v9093_v62 }
  0xbe   :  { %v9116_v46 = vsub.f32 %v100_v3, %v9095_v53  ;;  %v9119_v45 = vsub.f32 %v1422_v34, %v9097_v52  ;;  %v9122_v17 = vsub.f32 %v101_v35, %v9099_v44  ;;  %v9125_v36 = vsub.f32 %v1423_v13, %v9101_v43 }
  0xbf   :  { %11103 = vst [vmem:[#allocation51_spill] sm:$0xff] %v9104_v7  ;;  %11104 = vst [vmem:[#allocation52_spill] sm:$0xff] %v9107_v6  ;;  %v10777_v40 = vand.u32 4294901760, %v9104_v7  ;;  %v10779_v37 = vand.u32 4294901760, %v9107_v6  ;;  %v10781_v16 = vand.u32 4294901760, %v9110_v58  ;;  %v11111_v3 = vand.u32 4294901760, %v9113_v57 }
  0xc0   :  { %11105 = vst [vmem:[#allocation53_spill] sm:$0xff] %v9110_v58  ;;  %11106 = vst [vmem:[#allocation54_spill] sm:$0xff] %v9113_v57  ;;  %v11112_v34 = vand.u32 4294901760, %v9116_v46  ;;  %v11113_v61 = vand.u32 4294901760, %v9119_v45  ;;  %v11114_v60 = vand.u32 4294901760, %v9122_v17  ;;  %v11115_v48 = vand.u32 4294901760, %v9125_v36 }
  0xc1   :  { %11107 = vst [vmem:[#allocation55_spill] sm:$0xff] %v9116_v46  ;;  %11108 = vst [vmem:[#allocation56_spill] sm:$0xff] %v9119_v45  ;;  %v198_v13 = vsub.f32 %v9104_v7, %v10777_v40  ;;  %v1520_v0 = vsub.f32 %v9107_v6, %v10779_v37  ;;  %v208_v11 = vsub.f32 %v9110_v58, %v10781_v16 }
  0xc2   :  { %11109 = vst [vmem:[#allocation57_spill] sm:$0xff] %v9122_v17  ;;  %11110 = vst [vmem:[#allocation58_spill] sm:$0xff] %v9125_v36  ;;  %v1530_v1 = vsub.f32 %v9113_v57, %v11111_v3  ;;  %v218_v35 = vsub.f32 %v9116_v46, %v11112_v34  ;;  %v1540_v40 = vsub.f32 %v9119_v45, %v11113_v61 }
  0xc3   :  { %v228_v37 = vsub.f32 %v9122_v17, %v11114_v60  ;;  %v1550_v16 = vsub.f32 %v9125_v36, %v11115_v48  ;;  %v199_v3 = vand.u32 4294901760, %v198_v13  ;;  %v1521_v38 = vand.u32 4294901760, %v1520_v0 }
  0xc4   :  { %v209_v49 = vand.u32 4294901760, %v208_v11  ;;  %v1531_v34 = vand.u32 4294901760, %v1530_v1  ;;  %v219_v33 = vand.u32 4294901760, %v218_v35  ;;  %v1541_v61 = vand.u32 4294901760, %v1540_v40 }
  0xc5   :  { %6201 = vmatprep.mubr.f32.mxu0 %v199_v3  ;;  %6537 = vmatprep.mubr.f32.mxu1 %v1521_v38  ;;  %v229_v60 = vand.u32 4294901760, %v228_v37  ;;  %v102_v48 = vmul.f32 %v9059_v24, %v9159_v47  ;;  %v1424_v23 = vmul.f32 %v9061_v20, %v9159_v47  ;;  %v103_v0 = vmul.f32 %v9059_v24, %v9161_v39 }
  0xc6   :  { %6202 = vmatmul.mubr.f32.vlgmr.msra.gmra.mrb[0].mxu0 %v209_v49  ;;  %6538 = vmatmul.mubr.f32.vlgmr.msra.gmra.mrb[0].mxu1 %v1531_v34  ;;  %v1551_v1 = vand.u32 4294901760, %v1550_v16  ;;  %v1425_v40 = vmul.f32 %v9061_v20, %v9161_v39  ;;  %v104_v11 = vmul.f32 %v9059_v24, %v9163_v41  ;;  %v1426_v38 = vmul.f32 %v9061_v20, %v9163_v41 }
  0xc7   :  { %7548 = vmatpush3.bf16.msra.mxu0 %v8892_v56  ;;  %7740 = vmatpush3.bf16.msra.mxu1 %v8892_v56  ;;  %v9181_v37 = vand.u32 4294901760, %v102_v48  ;;  %v9183_v35 = vand.u32 4294901760, %v1424_v23  ;;  %v9185_v49 = vand.u32 4294901760, %v103_v0  ;;  %v105_v16 = vmul.f32 %v9059_v24, %v9165_v28 }
  0xc8   :  { %6204 = vmatprep.mubr.f32.mxu0 %v219_v33  ;;  %6540 = vmatprep.mubr.f32.mxu1 %v1541_v61  ;;  %v9189_v13 = vand.u32 4294901760, %v1425_v40  ;;  %v9191_v3 = vand.u32 4294901760, %v104_v11  ;;  %v9193_v34 = vand.u32 4294901760, %v1426_v38  ;;  %v1427_v56 = vmul.f32 %v9061_v20, %v9165_v28 }
  0xc9   :  { %7550 = vmatprep.subr.bf16.mxu0 %v8896_v59  ;;  %7742 = vmatprep.subr.bf16.mxu1 %v8896_v59  ;;  %v9200_v18 = vsub.f32 %v102_v48, %v9181_v37  ;;  %v9203_v36 = vsub.f32 %v1424_v23, %v9183_v35  ;;  %v9206_v33 = vsub.f32 %v103_v0, %v9185_v49  ;;  %v9208_v61 = vand.u32 4294901760, %v105_v16 }
  0xca   :  { %6205 = vmatmul.mubr.f32.gmra.mrb[2].mxu0 %v229_v60  ;;  %6541 = vmatmul.mubr.f32.gmra.mrb[2].mxu1 %v1551_v1  ;;  %v9211_v17 = vsub.f32 %v1425_v40, %v9189_v13  ;;  %v9214_v15 = vsub.f32 %v104_v11, %v9191_v3  ;;  %v9217_v45 = vsub.f32 %v1426_v38, %v9193_v34  ;;  %v9219_v48 = vand.u32 4294901760, %v1427_v56 }
  0xcb   :  { %11116 = vst [vmem:[#allocation59_spill] sm:$0xff] %v9200_v18  ;;  %11117 = vst [vmem:[#allocation60_spill] sm:$0xff] %v9203_v36  ;;  %7552 = vmatpush3.bf16.msra.mxu0 %v8896_v59  ;;  %7744 = vmatpush3.bf16.msra.mxu1 %v8896_v59  ;;  %v10815_v23 = vand.u32 4294901760, %v9200_v18  ;;  %v10818_v60 = vand.u32 4294901760, %v9203_v36  ;;  %v9227_v1 = vsub.f32 %v105_v16, %v9208_v61  ;;  %v11124_v46 = vand.u32 4294901760, %v9206_v33 }
  0xcc   :  { %11118 = vst [vmem:[#allocation61_spill] sm:$0xff] %v9206_v33  ;;  %11119 = vst [vmem:[#allocation62_spill] sm:$0xff] %v9211_v17  ;;  %7554 = vmatprep.subr.bf16.mxu0 %v8936_v10  ;;  %7746 = vmatprep.subr.bf16.mxu1 %v8936_v10  ;;  %v9235_v59 = vsub.f32 %v1427_v56, %v9219_v48  ;;  %v11125_v11 = vand.u32 4294901760, %v9211_v17  ;;  %v11126_v56 = vand.u32 4294901760, %v9214_v15 }
  0xcd   :  { %11120 = vst [vmem:[#allocation63_spill] sm:$0xff] %v9214_v15  ;;  %11121 = vst [vmem:[#allocation64_spill] sm:$0xff] %v9217_v45  ;;  %v238_v0 = vsub.f32 %v9200_v18, %v10815_v23  ;;  %v1560_v16 = vsub.f32 %v9203_v36, %v10818_v60  ;;  %v248_v57 = vsub.f32 %v9206_v33, %v11124_v46  ;;  %v11127_v23 = vand.u32 4294901760, %v9217_v45  ;;  %v9257_v36 = vld [vmem:[#allocation2 + $0x40] sm:$0xff] }
  0xce   :  { %11122 = vst [vmem:[#allocation65_spill] sm:$0xff] %v9227_v1  ;;  %11123 = vst [vmem:[#allocation66_spill] sm:$0xff] %v9235_v59  ;;  %v1570_v38 = vsub.f32 %v9211_v17, %v11125_v11  ;;  %v258_v58 = vsub.f32 %v9214_v15, %v11126_v56  ;;  %v11128_v11 = vand.u32 4294901760, %v9227_v1  ;;  %v9266_v15 = vld [vmem:[#allocation2 + $0x50] sm:$0xff] }
  0xcf   :  { %v1580_v18 = vsub.f32 %v9217_v45, %v11127_v23  ;;  %v239_v46 = vand.u32 4294901760, %v238_v0  ;;  %v1561_v40 = vand.u32 4294901760, %v1560_v16  ;;  %v249_v33 = vand.u32 4294901760, %v248_v57  ;;  %7556 = vmatpush3.bf16.msra.mxu0 %v8936_v10  ;;  %7748 = vmatpush3.bf16.msra.mxu1 %v8936_v10  ;;  %11129 = vst [vmem:[#allocation67_spill] sm:$0xff] %v9266_v15  ;;  %v9273_v16 = vld [vmem:[#allocation2 + $0x58] sm:$0xff] }
  0xd0   :  { %v268_v56 = vsub.f32 %v9227_v1, %v11128_v11  ;;  %v1571_v23 = vand.u32 4294901760, %v1570_v38  ;;  %v259_v45 = vand.u32 4294901760, %v258_v58  ;;  %7558 = vmatprep.subr.bf16.mxu0 %v8938_v14  ;;  %7750 = vmatprep.subr.bf16.mxu1 %v8938_v14  ;;  %v11130_v0 = vand.u32 4294901760, %v9235_v59  ;;  %11131 = vst [vmem:[#allocation68_spill] sm:$0xff] %v9273_v16 }
  0xd1   :  { %v1581_v60 = vand.u32 4294901760, %v1580_v18  ;;  %6207 = vmatprep.mubr.f32.mxu0 %v239_v46  ;;  %6543 = vmatprep.mubr.f32.mxu1 %v1561_v40  ;;  %v106_v11 = vmul.f32 %v9059_v24, %v9257_v36  ;;  %v1428_v58 = vmul.f32 %v9061_v20, %v9257_v36  ;;  %v107_v18 = vmul.f32 %v9059_v24, %v9259_v12 }
  0xd2   :  { %v1590_v57 = vsub.f32 %v9235_v59, %v11130_v0  ;;  %v269_v10 = vand.u32 4294901760, %v268_v56  ;;  %6208 = vmatmul.mubr.f32.gmra.mrb[4].mxu0 %v249_v33  ;;  %6544 = vmatmul.mubr.f32.gmra.mrb[4].mxu1 %v1571_v23  ;;  %v1429_v0 = vmul.f32 %v9061_v20, %v9259_v12  ;;  %v108_v46 = vmul.f32 %v9059_v24, %v9266_v15 }
  0xd3   :  { %v1430_v40 = vmul.f32 %v9061_v20, %v9266_v15  ;;  %6210 = vmatprep.mubr.f32.mxu0 %v259_v45  ;;  %6546 = vmatprep.mubr.f32.mxu1 %v1581_v60  ;;  %v9287_v56 = vand.u32 4294901760, %v106_v11  ;;  %v9289_v59 = vand.u32 4294901760, %v1428_v58  ;;  %v9291_v1 = vand.u32 4294901760, %v107_v18 }
  0xd4   :  { %v1591_v38 = vand.u32 4294901760, %v1590_v57  ;;  %v109_v33 = vmul.f32 %v9059_v24, %v9273_v16  ;;  %7560 = vmatpush3.bf16.msra.mxu0 %v8938_v14  ;;  %7752 = vmatpush3.bf16.msra.mxu1 %v8938_v14  ;;  %v9297_v23 = vand.u32 4294901760, %v1429_v0  ;;  %v9299_v57 = vand.u32 4294901760, %v108_v46 }
  0xd5   :  { %11132 = vst [vmem:[#allocation69_spill] sm:$0xff] %v9291_v1  ;;  %v9301_v17 = vand.u32 4294901760, %v1430_v40  ;;  %v1431_v45 = vmul.f32 %v9061_v20, %v9273_v16  ;;  %v9306_v60 = vsub.f32 %v106_v11, %v9287_v56  ;;  %v9309_v6 = vsub.f32 %v1428_v58, %v9289_v59  ;;  %7562 = vmatprep.subr.bf16.mxu0 %v8976_v30 }
  0xd6   :  { %11133 = vst [vmem:[#allocation70_spill] sm:$0xff] %v9297_v23  ;;  %11134 = vst [vmem:[#allocation71_spill] sm:$0xff] %v9299_v57  ;;  %7754 = vmatprep.subr.bf16.mxu1 %v8976_v30  ;;  %v9314_v14 = vsub.f32 %v107_v18, %v9291_v1  ;;  %v9316_v7 = vand.u32 4294901760, %v109_v33  ;;  %6211 = vmatmul.mubr.f32.gmra.mrb[6].mxu0 %v269_v10  ;;  %v9319_v54 = vsub.f32 %v1429_v0, %v9297_v23 }
  0xd7   :  { %11135 = vst [vmem:[#allocation72_spill] sm:$0xff] %v9301_v17  ;;  %11136 = vst [vmem:[#allocation73_spill] sm:$0xff] %v9306_v60  ;;  %6547 = vmatmul.mubr.f32.gmra.mrb[6].mxu1 %v1591_v38  ;;  %v9322_v11 = vsub.f32 %v108_v46, %v9299_v57  ;;  %v9325_v58 = vsub.f32 %v1430_v40, %v9301_v17  ;;  %v9327_v51 = vand.u32 4294901760, %v1431_v45  ;;  %v10850_v27 = vand.u32 4294901760, %v9306_v60 }
  0xd8   :  { %11137 = vst [vmem:[#allocation74_spill] sm:$0xff] %v9309_v6  ;;  %11138 = vst [vmem:[#allocation75_spill] sm:$0xff] %v9314_v14  ;;  %v10853_v18 = vand.u32 4294901760, %v9309_v6  ;;  %v9333_v10 = vsub.f32 %v109_v33, %v9316_v7  ;;  %7564 = vmatpush3.bf16.msra.mxu0 %v8976_v30  ;;  %7756 = vmatpush3.bf16.msra.mxu1 %v8976_v30 }
  0xd9   :  { %11139 = vst [vmem:[#allocation76_spill] sm:$0xff] %v9316_v7  ;;  %11140 = vst [vmem:[#allocation77_spill] sm:$0xff] %v9319_v54  ;;  %v9341_v40 = vsub.f32 %v1431_v45, %v9327_v51  ;;  %v278_v16 = vsub.f32 %v9306_v60, %v10850_v27  ;;  %v11146_v7 = vand.u32 4294901760, %v9314_v14  ;;  %7566 = vmatprep.subr.bf16.mxu0 %v8978_v55  ;;  %7758 = vmatprep.subr.bf16.mxu1 %v8978_v55  ;;  %v9367_v60 = vld [vmem:[#allocation2 + $0x68] sm:$0xff] }
  0xda   :  { %11141 = vst [vmem:[#allocation78_spill] sm:$0xff] %v9322_v11  ;;  %11142 = vst [vmem:[#allocation79_spill] sm:$0xff] %v9325_v58  ;;  %v1600_v33 = vsub.f32 %v9309_v6, %v10853_v18  ;;  %v11147_v45 = vand.u32 4294901760, %v9319_v54  ;;  %v11148_v27 = vand.u32 4294901760, %v9322_v11  ;;  %v11149_v18 = vand.u32 4294901760, %v9325_v58 }
  0xdb   :  { %11143 = vst [vmem:[#allocation80_spill] sm:$0xff] %v9327_v51  ;;  %11144 = vst [vmem:[#allocation81_spill] sm:$0xff] %v9333_v10  ;;  %v288_v38 = vsub.f32 %v9314_v14, %v11146_v7  ;;  %v10872_v7 = vand.u32 4294901760, %v9341_v40  ;;  %v9365_v14 = vld [vmem:[#allocation2 + $0x60] sm:$0xff]  ;;  %v279_v51 = vand.u32 4294901760, %v278_v16  ;;  %v11152_v17 = vand.u32 4294901760, %v9333_v10 }
  0xdc   :  { %11145 = vst [vmem:[#allocation82_spill] sm:$0xff] %v9341_v40  ;;  %v1610_v0 = vsub.f32 %v9319_v54, %v11147_v45  ;;  %v298_v30 = vsub.f32 %v9322_v11, %v11148_v27  ;;  %v1620_v6 = vsub.f32 %v9325_v58, %v11149_v18  ;;  %11150 = vst [vmem:[#allocation83_spill] sm:$0xff] %v9365_v14  ;;  %v1601_v46 = vand.u32 4294901760, %v1600_v33  ;;  %v9372_v54 = vld [vmem:[#allocation2 + $0x70] sm:$0xff]  ;;  %v9379_v16 = vld [vmem:[#allocation2 + $0x78] sm:$0xff] }
  0xdd   :  { %11151 = vst [vmem:[#allocation84_spill] sm:$0xff] %v9367_v60  ;;  %v289_v15 = vand.u32 4294901760, %v288_v38  ;;  %v308_v45 = vsub.f32 %v9333_v10, %v11152_v17  ;;  %11153 = vst [vmem:[#allocation85_spill] sm:$0xff] %v9372_v54  ;;  %7568 = vmatpush3.bf16.msra.mxu0 %v8978_v55  ;;  %v1630_v18 = vsub.f32 %v9341_v40, %v10872_v7  ;;  %7760 = vmatpush3.bf16.msra.mxu1 %v8978_v55 }
  0xde   :  { %v1611_v27 = vand.u32 4294901760, %v1610_v0  ;;  %v299_v11 = vand.u32 4294901760, %v298_v30  ;;  %v1621_v57 = vand.u32 4294901760, %v1620_v6  ;;  %11154 = vst [vmem:[#allocation86_spill] sm:$0xff] %v9379_v16  ;;  %6213 = vmatprep.mubr.f32.mxu0 %v279_v51  ;;  %6549 = vmatprep.mubr.f32.mxu1 %v1601_v46  ;;  %v110_v17 = vmul.f32 %v9059_v24, %v9365_v14 }
  0xdf   :  { %v309_v38 = vand.u32 4294901760, %v308_v45  ;;  %v1432_v30 = vmul.f32 %v9061_v20, %v9365_v14  ;;  %v111_v6 = vmul.f32 %v9059_v24, %v9367_v60  ;;  %6214 = vmatmul.mubr.f32.gmra.mrb[8].mxu0 %v289_v15  ;;  %v1631_v0 = vand.u32 4294901760, %v1630_v18  ;;  %7570 = vmatprep.subr.bf16.mxu0 %v9020_v9 }
  0xe0   :  { %6550 = vmatmul.mubr.f32.gmra.mrb[8].mxu1 %v1611_v27  ;;  %v1433_v33 = vmul.f32 %v9061_v20, %v9367_v60  ;;  %v112_v51 = vmul.f32 %v9059_v24, %v9372_v54  ;;  %v1434_v46 = vmul.f32 %v9061_v20, %v9372_v54  ;;  %6216 = vmatprep.mubr.f32.mxu0 %v299_v11  ;;  %v9393_v45 = vand.u32 4294901760, %v110_v17 }
  0xe1   :  { %6552 = vmatprep.mubr.f32.mxu1 %v1621_v57  ;;  %v9395_v7 = vand.u32 4294901760, %v1432_v30  ;;  %v9397_v55 = vand.u32 4294901760, %v111_v6  ;;  %v113_v15 = vmul.f32 %v9059_v24, %v9379_v16  ;;  %7762 = vmatprep.subr.bf16.mxu1 %v9020_v9  ;;  %v1435_v57 = vmul.f32 %v9061_v20, %v9379_v16 }
  0xe2   :  { %11155 = vst [vmem:[#allocation87_spill] sm:$0xff] %v9393_v45  ;;  %v9403_v27 = vand.u32 4294901760, %v1433_v33  ;;  %v9405_v18 = vand.u32 4294901760, %v112_v51  ;;  %v9407_v40 = vand.u32 4294901760, %v1434_v46  ;;  %v9412_v11 = vsub.f32 %v110_v17, %v9393_v45  ;;  %7572 = vmatpush3.bf16.msra.mxu0 %v9020_v9  ;;  %7764 = vmatpush3.bf16.msra.mxu1 %v9020_v9 }
  0xe3   :  { %11156 = vst [vmem:[#allocation88_spill] sm:$0xff] %v9395_v7  ;;  %11157 = vst [vmem:[#allocation89_spill] sm:$0xff] %v9397_v55  ;;  %v9415_v10 = vsub.f32 %v1432_v30, %v9395_v7  ;;  %v9418_v24 = vsub.f32 %v111_v6, %v9397_v55  ;;  %v9422_v58 = vand.u32 4294901760, %v113_v15  ;;  %6217 = vmatmul.mubr.f32.gmra.mrb[10].mxu0 %v309_v38  ;;  %v9433_v30 = vand.u32 4294901760, %v1435_v57 }
  0xe4   :  { %11158 = vst [vmem:[#allocation90_spill] sm:$0xff] %v9403_v27  ;;  %11159 = vst [vmem:[#allocation91_spill] sm:$0xff] %v9405_v18  ;;  %6553 = vmatmul.mubr.f32.gmra.mrb[10].mxu1 %v1631_v0  ;;  %v9425_v54 = vsub.f32 %v1433_v33, %v9403_v27  ;;  %v9428_v20 = vsub.f32 %v112_v51, %v9405_v18  ;;  %v9431_v17 = vsub.f32 %v1434_v46, %v9407_v40 }
  0xe5   :  { %11160 = vst [vmem:[#allocation92_spill] sm:$0xff] %v9407_v40  ;;  %11161 = vst [vmem:[#allocation93_spill] sm:$0xff] %v9412_v11  ;;  %v10891_v6 = vand.u32 4294901760, %v9412_v11  ;;  %v10892_v16 = vand.u32 4294901760, %v9415_v10  ;;  %7574 = vmatprep.subr.bf16.mxu0 %v9022_v21  ;;  %7766 = vmatprep.subr.bf16.mxu1 %v9022_v21  ;;  %v9441_v38 = vsub.f32 %v113_v15, %v9422_v58  ;;  %v11168_v15 = vand.u32 4294901760, %v9418_v24 }
  0xe6   :  { %11162 = vst [vmem:[#allocation94_spill] sm:$0xff] %v9415_v10  ;;  %11163 = vst [vmem:[#allocation95_spill] sm:$0xff] %v9418_v24  ;;  %v10903_v33 = vand.u32 4294901760, %v9428_v20  ;;  %v9447_v46 = vsub.f32 %v1435_v57, %v9433_v30  ;;  %7576 = vmatpush3.bf16.msra.mxu0 %v9022_v21  ;;  %7768 = vmatpush3.bf16.msra.mxu1 %v9022_v21  ;;  %v11169_v57 = vand.u32 4294901760, %v9425_v54 }
  0xe7   :  { %11164 = vst [vmem:[#allocation96_spill] sm:$0xff] %v9422_v58  ;;  %11165 = vst [vmem:[#allocation97_spill] sm:$0xff] %v9425_v54  ;;  %v318_v9 = vsub.f32 %v9412_v11, %v10891_v6  ;;  %v1640_v60 = vsub.f32 %v9415_v10, %v10892_v16  ;;  %v328_v14 = vsub.f32 %v9418_v24, %v11168_v15  ;;  %v11170_v16 = vand.u32 4294901760, %v9431_v17 }
  0xe8   :  { %11166 = vst [vmem:[#allocation98_spill] sm:$0xff] %v9431_v17  ;;  %11167 = vst [vmem:[#allocation99_spill] sm:$0xff] %v9433_v30  ;;  %v1650_v51 = vsub.f32 %v9425_v54, %v11169_v57  ;;  %v338_v6 = vsub.f32 %v9428_v20, %v10903_v33  ;;  %v10906_v15 = vand.u32 4294901760, %v9447_v46  ;;  %7578 = vmatprep.subr.bf16.mxu0 %v9018_v42  ;;  %7770 = vmatprep.subr.bf16.mxu1 %v9018_v42 }
  0xe9   :  { %v1660_v10 = vsub.f32 %v9431_v17, %v11170_v16  ;;  %v319_v0 = vand.u32 4294901760, %v318_v9  ;;  %v1641_v21 = vand.u32 4294901760, %v1640_v60  ;;  %v11171_v24 = vand.u32 4294901760, %v9441_v38 }
  0xea   :  { %v329_v54 = vand.u32 4294901760, %v328_v14  ;;  %v1651_v11 = vand.u32 4294901760, %v1650_v51  ;;  %v1670_v33 = vsub.f32 %v9447_v46, %v10906_v15  ;;  %v339_v16 = vand.u32 4294901760, %v338_v6 }
  0xeb   :  { %v348_v57 = vsub.f32 %v9441_v38, %v11171_v24  ;;  %6219 = vmatprep.mubr.f32.mxu0 %v319_v0  ;;  %6555 = vmatprep.mubr.f32.mxu1 %v1641_v21  ;;  %v1661_v17 = vand.u32 4294901760, %v1660_v10  ;;  %v9481_v9 = vmul.f32 %v9063_v19, %v9055_v2  ;;  %v9485_v14 = vmul.f32 %v9065_v31, %v9055_v2 }
  0xec   :  { %6220 = vmatmul.mubr.f32.gmra.mrb[12].mxu0 %v329_v54  ;;  %6556 = vmatmul.mubr.f32.gmra.mrb[12].mxu1 %v1651_v11  ;;  %v9489_v24 = vmul.f32 %v9063_v19, %v9057_v25  ;;  %v9493_v21 = vmul.f32 %v9065_v31, %v9057_v25  ;;  %v1671_v54 = vand.u32 4294901760, %v1670_v33  ;;  %v9497_v10 = vmul.f32 %v9063_v19, %v9067_v32 }
  0xed   :  { %11172 = vst [vmem:[#allocation100_spill] sm:$0xff] %v9481_v9  ;;  %6222 = vmatprep.mubr.f32.mxu0 %v339_v16  ;;  %6558 = vmatprep.mubr.f32.mxu1 %v1661_v17  ;;  %v349_v60 = vand.u32 4294901760, %v348_v57  ;;  %11173 = vst [vmem:[#allocation101_spill] sm:$0xff] %v9485_v14  ;;  %v9501_v11 = vmul.f32 %v9065_v31, %v9067_v32  ;;  %v9505_v2 = vmul.f32 %v9063_v19, %v9069_v8  ;;  %v11192_v16 = vld [vmem:[#allocation71_spill] sm:$0xff]  ;;  %v11244_v14 = vld [vmem:[#allocation16_spill] sm:$0xff] }
  0xee   :  { %11174 = vst [vmem:[#allocation102_spill] sm:$0xff] %v9489_v24  ;;  %11175 = vst [vmem:[#allocation103_spill] sm:$0xff] %v9493_v21  ;;  %v9509_v17 = vmul.f32 %v9065_v31, %v9069_v8  ;;  %v9525_v25 = vmul.f32 %v9063_v19, %v9159_v47  ;;  %v9531_v32 = vmul.f32 %v9065_v31, %v9159_v47  ;;  %v11242_v21 = vld [vmem:[#allocation78_spill] sm:$0xff]  ;;  %v11243_v24 = vld [vmem:[#allocation79_spill] sm:$0xff] }
  0xef   :  { %11176 = vst [vmem:[#allocation104_spill] sm:$0xff] %v9497_v10  ;;  %11177 = vst [vmem:[#allocation105_spill] sm:$0xff] %v9501_v11  ;;  %v9535_v8 = vmul.f32 %v9063_v19, %v9161_v39  ;;  %v9539_v6 = vmul.f32 %v9065_v31, %v9161_v39  ;;  %v9545_v0 = vmul.f32 %v9063_v19, %v9163_v41  ;;  %v11240_v11 = vld [vmem:[#allocation75_spill] sm:$0xff]  ;;  %v11241_v10 = vld [vmem:[#allocation77_spill] sm:$0xff] }
  0xf0   :  { %11178 = vst [vmem:[#allocation106_spill] sm:$0xff] %v9505_v2  ;;  %11179 = vst [vmem:[#allocation107_spill] sm:$0xff] %v9509_v17  ;;  %6223 = vmatmul.mubr.f32.gmra.mrb[14].mxu0 %v349_v60  ;;  %6559 = vmatmul.mubr.f32.gmra.mrb[14].mxu1 %v1671_v54  ;;  %v9549_v47 = vmul.f32 %v9065_v31, %v9163_v41  ;;  %v9553_v33 = vmul.f32 %v9063_v19, %v9165_v28  ;;  %v11193_v60 = vld [vmem:[#allocation72_spill] sm:$0xff]  ;;  %v11194_v54 = vld [vmem:[#allocation67_spill] sm:$0xff] }
  0xf1   :  { %6257 = vmatprep.mubr.f32.mxu0 %v9087_v5  ;;  %6593 = vmatprep.mubr.f32.mxu1 %v9089_v4  ;;  %11180 = vst [vmem:[#allocation108_spill] sm:$0xff] %v9525_v25  ;;  %11181 = vst [vmem:[#allocation109_spill] sm:$0xff] %v9531_v32  ;;  %v9559_v39 = vmul.f32 %v9065_v31, %v9165_v28  ;;  %v9581_v28 = vmul.f32 %v9063_v19, %v9257_v36  ;;  %v11236_v32 = vld [vmem:[#allocation66_spill] sm:$0xff]  ;;  %v11237_v25 = vld [vmem:[#allocation73_spill] sm:$0xff] }
  0xf2   :  { %11182 = vst [vmem:[#allocation110_spill] sm:$0xff] %v9535_v8  ;;  %11183 = vst [vmem:[#allocation111_spill] sm:$0xff] %v9539_v6  ;;  %v9587_v41 = vmul.f32 %v9065_v31, %v9257_v36  ;;  %v9591_v51 = vmul.f32 %v9063_v19, %v9259_v12  ;;  %v9595_v57 = vmul.f32 %v9065_v31, %v9259_v12  ;;  %v11234_v6 = vld [vmem:[#allocation14_spill] sm:$0xff]  ;;  %v11235_v8 = vld [vmem:[#allocation65_spill] sm:$0xff] }
  0xf3   :  { %11184 = vst [vmem:[#allocation112_spill] sm:$0xff] %v9545_v0  ;;  %11185 = vst [vmem:[#allocation113_spill] sm:$0xff] %v9549_v47  ;;  %v9601_v15 = vmul.f32 %v9063_v19, %v11194_v54  ;;  %v9605_v36 = vmul.f32 %v9065_v31, %v11194_v54  ;;  %v11203_v54 = vld [vmem:[#allocation49_spill] sm:$0xff]  ;;  %v11232_v47 = vld [vmem:[#allocation63_spill] sm:$0xff] }
  0xf4   :  { %6258 = vmatmul.mubr.f32.vlgmr.msra.gmra.mrb[0].mxu0 %v9091_v63  ;;  %6594 = vmatmul.mubr.f32.vlgmr.msra.gmra.mrb[0].mxu1 %v9093_v62  ;;  %11186 = vst [vmem:[#allocation114_spill] sm:$0xff] %v9553_v33  ;;  %11187 = vst [vmem:[#allocation115_spill] sm:$0xff] %v9559_v39  ;;  %v11230_v39 = vld [vmem:[#allocation61_spill] sm:$0xff]  ;;  %v11231_v33 = vld [vmem:[#allocation62_spill] sm:$0xff] }
  0xf5   :  { %7580 = vmatpush3.bf16.msra.mxu0 %v9018_v42  ;;  %7772 = vmatpush3.bf16.msra.mxu1 %v9018_v42  ;;  %11188 = vst [vmem:[#allocation116_spill] sm:$0xff] %v9581_v28  ;;  %11189 = vst [vmem:[#allocation117_spill] sm:$0xff] %v9587_v41  ;;  %v11202_v42 = vld [vmem:[#allocation80_spill] sm:$0xff]  ;;  %v11221_v28 = vld [vmem:[#allocation54_spill] sm:$0xff] }
  0xf6   :  { %6260 = vmatprep.mubr.f32.mxu0 %v9095_v53  ;;  %6596 = vmatprep.mubr.f32.mxu1 %v9097_v52  ;;  %11190 = vst [vmem:[#allocation118_spill] sm:$0xff] %v9591_v51  ;;  %11191 = vst [vmem:[#allocation119_spill] sm:$0xff] %v9595_v57  ;;  %v11211_v57 = vld [vmem:[#allocation51_spill] sm:$0xff]  ;;  %v11212_v51 = vld [vmem:[#allocation52_spill] sm:$0xff] }
  0xf7   :  { %7582 = vmatprep.subr.bf16.mxu0 %v9026_v22  ;;  %7774 = vmatprep.subr.bf16.mxu1 %v9026_v22  ;;  %11195 = vst [vmem:[#allocation67_spill] sm:$0xff] %v9601_v15  ;;  %11196 = vst [vmem:[#allocation120_spill] sm:$0xff] %v9605_v36  ;;  %v11233_v0 = vld [vmem:[#allocation64_spill] sm:$0xff]  ;;  %v11238_v17 = vld [vmem:[#allocation74_spill] sm:$0xff] }
  0xf8   :  { %6261 = vmatmul.mubr.f32.gmra.mrb[2].mxu0 %v9099_v44  ;;  %6597 = vmatmul.mubr.f32.gmra.mrb[2].mxu1 %v9101_v43  ;;  %v11239_v2 = vld [vmem:[#allocation15_spill] sm:$0xff]  ;;  %v11245_v9 = vld [vmem:[#allocation81_spill] sm:$0xff] }
  0xf9   :  { %7584 = vmatpush3.bf16.msra.mxu0 %v9026_v22  ;;  %7776 = vmatpush3.bf16.msra.mxu1 %v9026_v22  ;;  %v11201_v22 = vld [vmem:[#allocation76_spill] sm:$0xff] }
  0xfa   :  { %6263 = vmatprep.mubr.f32.mxu0 %v9181_v37  ;;  %6599 = vmatprep.mubr.f32.mxu1 %v9183_v35 }
  0xfb   :  { %7586 = vmatprep.subr.bf16.mxu0 %v9030_v50  ;;  %7778 = vmatprep.subr.bf16.mxu1 %v9030_v50 }
  0xfc   :  { %6264 = vmatmul.mubr.f32.gmra.mrb[4].mxu0 %v9185_v49  ;;  %6600 = vmatmul.mubr.f32.gmra.mrb[4].mxu1 %v9189_v13 }
  0xfd   :  { %7588 = vmatpush3.bf16.msra.mxu0 %v9030_v50  ;;  %7780 = vmatpush3.bf16.msra.mxu1 %v9030_v50  ;;  %v11199_v50 = vld [vmem:[#allocation48_spill] sm:$0xff] }
  0xfe   :  { %6266 = vmatprep.mubr.f32.mxu0 %v9191_v3  ;;  %6602 = vmatprep.mubr.f32.mxu1 %v9193_v34 }
  0xff   :  { %7590 = vmatprep.subr.bf16.mxu0 %v9034_v26  ;;  %7782 = vmatprep.subr.bf16.mxu1 %v9034_v26 }
 0x100   :  { %6267 = vmatmul.mubr.f32.gmra.mrb[6].mxu0 %v9208_v61  ;;  %6603 = vmatmul.mubr.f32.gmra.mrb[6].mxu1 %v9219_v48 }
 0x101   :  { %7592 = vmatpush3.bf16.msra.mxu0 %v9034_v26  ;;  %7784 = vmatpush3.bf16.msra.mxu1 %v9034_v26 }
 0x102   :  { %6269 = vmatprep.mubr.f32.mxu0 %v9287_v56  ;;  %6605 = vmatprep.mubr.f32.mxu1 %v9289_v59 }
 0x103   :  { %7594 = vmatprep.subr.bf16.mxu0 %v9038_v29  ;;  %7786 = vmatprep.subr.bf16.mxu1 %v9038_v29 }
 0x104   :  { %6270 = vmatmul.mubr.f32.gmra.mrb[8].mxu0 %v9291_v1  ;;  %6606 = vmatmul.mubr.f32.gmra.mrb[8].mxu1 %v9297_v23  ;;  %v11260_v23 = vand.u32 4294901760, %v11212_v51 }
 0x105   :  { %7596 = vmatpush3.bf16.msra.mxu0 %v9038_v29  ;;  %7788 = vmatpush3.bf16.msra.mxu1 %v9038_v29  ;;  %v11197_v29 = vld [vmem:[#allocation68_spill] sm:$0xff] }
 0x106   :  { %6272 = vmatprep.mubr.f32.mxu0 %v11192_v16  ;;  %6608 = vmatprep.mubr.f32.mxu1 %v11193_v60  ;;  %v9609_v26 = vmul.f32 %v9063_v19, %v11197_v29  ;;  %v9615_v12 = vmul.f32 %v9065_v31, %v11197_v29  ;;  %v11204_v29 = vld [vmem:[#allocation50_spill] sm:$0xff] }
 0x107   :  { %7598 = vmatprep.subr.bf16.mxu0 %v11199_v50  ;;  %7790 = vmatprep.subr.bf16.mxu1 %v11199_v50 }
 0x108   :  { %11198 = vst [vmem:[#allocation68_spill] sm:$0xff] %v9609_v26  ;;  %11200 = vst [vmem:[#allocation121_spill] sm:$0xff] %v9615_v12  ;;  %6273 = vmatmul.mubr.f32.gmra.mrb[10].mxu0 %v11201_v22  ;;  %6609 = vmatmul.mubr.f32.gmra.mrb[10].mxu1 %v11202_v42  ;;  %v11208_v26 = vld [vmem:[#allocation84_spill] sm:$0xff]  ;;  %v11254_v42 = vld [vmem:[#allocation17_spill] sm:$0xff] }
 0x109   :  { %7600 = vmatpush3.bf16.msra.mxu0 %v11199_v50  ;;  %7792 = vmatpush3.bf16.msra.mxu1 %v11199_v50  ;;  %v11205_v50 = vld [vmem:[#allocation83_spill] sm:$0xff]  ;;  %v9647_v36 = vmul.f32 %v9063_v19, %v11208_v26  ;;  %v9651_v15 = vmul.f32 %v9065_v31, %v11208_v26  ;;  %v11255_v22 = vand.u32 4294901760, %v11254_v42  ;;  %v11261_v42 = vld [vmem:[#allocation20_spill] sm:$0xff] }
 0x10a   :  { %6275 = vmatprep.mubr.f32.mxu0 %v9393_v45  ;;  %6611 = vmatprep.mubr.f32.mxu1 %v9395_v7  ;;  %v9637_v12 = vmul.f32 %v9063_v19, %v11205_v50  ;;  %v11252_v7 = vld [vmem:[#allocation98_spill] sm:$0xff] }
 0x10b   :  { %7602 = vmatprep.subr.bf16.mxu0 %v11203_v54  ;;  %7794 = vmatprep.subr.bf16.mxu1 %v11203_v54  ;;  %11209 = vst [vmem:[#allocation84_spill] sm:$0xff] %v9647_v36  ;;  %11210 = vst [vmem:[#allocation123_spill] sm:$0xff] %v9651_v15  ;;  %v11218_v36 = vld [vmem:[#allocation11_spill] sm:$0xff]  ;;  %v11220_v15 = vld [vmem:[#allocation53_spill] sm:$0xff] }
 0x10c   :  { %6276 = vmatmul.mubr.f32.gmra.mrb[12].mxu0 %v9397_v55  ;;  %6612 = vmatmul.mubr.f32.gmra.mrb[12].mxu1 %v9403_v27  ;;  %11206 = vst [vmem:[#allocation83_spill] sm:$0xff] %v9637_v12  ;;  %v11213_v12 = vld [vmem:[#allocation85_spill] sm:$0xff]  ;;  %v11250_v27 = vld [vmem:[#allocation95_spill] sm:$0xff]  ;;  %v11253_v45 = vld [vmem:[#allocation22_spill] sm:$0xff] }
 0x10d   :  { %7604 = vmatpush3.bf16.msra.mxu0 %v11203_v54  ;;  %7796 = vmatpush3.bf16.msra.mxu1 %v11203_v54  ;;  %v9643_v54 = vmul.f32 %v9065_v31, %v11205_v50  ;;  %v9657_v41 = vmul.f32 %v9063_v19, %v11213_v12  ;;  %v9661_v50 = vmul.f32 %v9065_v31, %v11213_v12  ;;  %v11222_v12 = vld [vmem:[#allocation55_spill] sm:$0xff]  ;;  %v11251_v55 = vld [vmem:[#allocation97_spill] sm:$0xff] }
 0x10e   :  { %6278 = vmatprep.mubr.f32.mxu0 %v9405_v18  ;;  %6614 = vmatprep.mubr.f32.mxu1 %v9407_v40  ;;  %v11248_v40 = vld [vmem:[#allocation94_spill] sm:$0xff]  ;;  %v11249_v18 = vld [vmem:[#allocation19_spill] sm:$0xff] }
 0x10f   :  { %7606 = vmatprep.subr.bf16.mxu0 %v11204_v29  ;;  %7798 = vmatprep.subr.bf16.mxu1 %v11204_v29  ;;  %11207 = vst [vmem:[#allocation122_spill] sm:$0xff] %v9643_v54  ;;  %11214 = vst [vmem:[#allocation51_spill] sm:$0xff] %v9657_v41  ;;  %v11229_v41 = vld [vmem:[#allocation13_spill] sm:$0xff] }
 0x110   :  { %6279 = vmatmul.mubr.f32.gmra.mrb[14].mxu0 %v9422_v58  ;;  %6615 = vmatmul.mubr.f32.gmra.mrb[14].mxu1 %v9433_v30  ;;  %11215 = vst [vmem:[#allocation52_spill] sm:$0xff] %v9661_v50  ;;  %v11225_v50 = vld [vmem:[#allocation57_spill] sm:$0xff]  ;;  %v11246_v30 = vld [vmem:[#allocation82_spill] sm:$0xff] }
 0x111   :  { %7608 = vmatpush3.bf16.msra.mxu0 %v11204_v29  ;;  %7800 = vmatpush3.bf16.msra.mxu1 %v11204_v29  ;;  %v11216_v29 = vld [vmem:[#allocation86_spill] sm:$0xff]  ;;  %v11247_v58 = vld [vmem:[#allocation93_spill] sm:$0xff] }
 0x112   :  { %6313 = vmatprep.mubr.f32.mxu0 %v11211_v57  ;;  %6649 = vmatprep.mubr.f32.mxu1 %v11212_v51  ;;  %v9665_v54 = vmul.f32 %v9063_v19, %v11216_v29  ;;  %v9671_v26 = vmul.f32 %v9065_v31, %v11216_v29  ;;  %v11223_v19 = vld [vmem:[#allocation56_spill] sm:$0xff]  ;;  %v11226_v31 = vld [vmem:[#allocation58_spill] sm:$0xff]  ;;  %v11227_v29 = vld [vmem:[#allocation59_spill] sm:$0xff] }
 0x113   :  { %7610 = vmatprep.subr.bf16.mxu0 %v11218_v36  ;;  %7802 = vmatprep.subr.bf16.mxu1 %v11218_v36  ;;  %v11270_v51 = vld [vmem:[#allocation25_spill] sm:$0xff] }
 0x114   :  { %11217 = vst [vmem:[#allocation85_spill] sm:$0xff] %v9665_v54  ;;  %11219 = vst [vmem:[#allocation86_spill] sm:$0xff] %v9671_v26  ;;  %6314 = vmatmul.mubr.f32.vlgmr.msra.gmra.mrb[0].mxu0 %v11220_v15  ;;  %6650 = vmatmul.mubr.f32.vlgmr.msra.gmra.mrb[0].mxu1 %v11221_v28  ;;  %v11224_v54 = vld [vmem:[#allocation12_spill] sm:$0xff] }
 0x115   :  { %7612 = vmatpush3.bf16.msra.mxu0 %v11218_v36  ;;  %7804 = vmatpush3.bf16.msra.mxu1 %v11218_v36  ;;  %v11228_v26 = vld [vmem:[#allocation60_spill] sm:$0xff] }
 0x116   :  { %6316 = vmatprep.mubr.f32.mxu0 %v11222_v12  ;;  %6652 = vmatprep.mubr.f32.mxu1 %v11223_v19 }
 0x117   :  { %7614 = vmatprep.subr.bf16.mxu0 %v11224_v54  ;;  %7806 = vmatprep.subr.bf16.mxu1 %v11224_v54 }
 0x118   :  { %6317 = vmatmul.mubr.f32.gmra.mrb[2].mxu0 %v11225_v50  ;;  %6653 = vmatmul.mubr.f32.gmra.mrb[2].mxu1 %v11226_v31 }
 0x119   :  { %7616 = vmatpush3.bf16.msra.mxu0 %v11224_v54  ;;  %7808 = vmatpush3.bf16.msra.mxu1 %v11224_v54 }
 0x11a   :  { %6319 = vmatprep.mubr.f32.mxu0 %v11227_v29  ;;  %6655 = vmatprep.mubr.f32.mxu1 %v11228_v26 }
 0x11b   :  { %7618 = vmatprep.subr.bf16.mxu0 %v11229_v41  ;;  %7810 = vmatprep.subr.bf16.mxu1 %v11229_v41 }
 0x11c   :  { %6320 = vmatmul.mubr.f32.gmra.mrb[4].mxu0 %v11230_v39  ;;  %6656 = vmatmul.mubr.f32.gmra.mrb[4].mxu1 %v11231_v33 }
 0x11d   :  { %7620 = vmatpush3.bf16.msra.mxu0 %v11229_v41  ;;  %7812 = vmatpush3.bf16.msra.mxu1 %v11229_v41 }
 0x11e   :  { %6322 = vmatprep.mubr.f32.mxu0 %v11232_v47  ;;  %6658 = vmatprep.mubr.f32.mxu1 %v11233_v0 }
 0x11f   :  { %7622 = vmatprep.subr.bf16.mxu0 %v11234_v6  ;;  %7814 = vmatprep.subr.bf16.mxu1 %v11234_v6 }
 0x120   :  { %6323 = vmatmul.mubr.f32.gmra.mrb[6].mxu0 %v11235_v8  ;;  %6659 = vmatmul.mubr.f32.gmra.mrb[6].mxu1 %v11236_v32 }
 0x121   :  { %7624 = vmatpush3.bf16.msra.mxu0 %v11234_v6  ;;  %7816 = vmatpush3.bf16.msra.mxu1 %v11234_v6 }
 0x122   :  { %6325 = vmatprep.mubr.f32.mxu0 %v11237_v25  ;;  %6661 = vmatprep.mubr.f32.mxu1 %v11238_v17 }
 0x123   :  { %7626 = vmatprep.subr.bf16.mxu0 %v11239_v2  ;;  %7818 = vmatprep.subr.bf16.mxu1 %v11239_v2 }
 0x124   :  { %6326 = vmatmul.mubr.f32.gmra.mrb[8].mxu0 %v11240_v11  ;;  %6662 = vmatmul.mubr.f32.gmra.mrb[8].mxu1 %v11241_v10 }
 0x125   :  { %7628 = vmatpush3.bf16.msra.mxu0 %v11239_v2  ;;  %7820 = vmatpush3.bf16.msra.mxu1 %v11239_v2  ;;  %v11266_v2 = vand.u32 4294901760, %v11220_v15  ;;  %v11271_v15 = vand.u32 4294901760, %v11270_v51  ;;  %v11288_v51 = vld [vmem:[#allocation31_spill] sm:$0xff] }
 0x126   :  { %6328 = vmatprep.mubr.f32.mxu0 %v11242_v21  ;;  %6664 = vmatprep.mubr.f32.mxu1 %v11243_v24 }
 0x127   :  { %7630 = vmatprep.subr.bf16.mxu0 %v11244_v14  ;;  %7822 = vmatprep.subr.bf16.mxu1 %v11244_v14 }
 0x128   :  { %6329 = vmatmul.mubr.f32.gmra.mrb[10].mxu0 %v11245_v9  ;;  %6665 = vmatmul.mubr.f32.gmra.mrb[10].mxu1 %v11246_v30 }
 0x129   :  { %7632 = vmatpush3.bf16.msra.mxu0 %v11244_v14  ;;  %7824 = vmatpush3.bf16.msra.mxu1 %v11244_v14  ;;  %v11256_v14 = vld [vmem:[#allocation18_spill] sm:$0xff] }
 0x12a   :  { %6331 = vmatprep.mubr.f32.mxu0 %v11247_v58  ;;  %6667 = vmatprep.mubr.f32.mxu1 %v11248_v40  ;;  %v11257_v60 = vand.u32 4294901760, %v11256_v14  ;;  %v11263_v14 = vld [vmem:[#allocation21_spill] sm:$0xff] }
 0x12b   :  { %7634 = vmatprep.subr.bf16.mxu0 %v11249_v18  ;;  %7826 = vmatprep.subr.bf16.mxu1 %v11249_v18 }
 0x12c   :  { %6332 = vmatmul.mubr.f32.gmra.mrb[12].mxu0 %v11250_v27  ;;  %6668 = vmatmul.mubr.f32.gmra.mrb[12].mxu1 %v11251_v55  ;;  %v9733_v16 = vpack.c.bf16 %v11257_v60, %v11255_v22  ;;  %v11262_v22 = vand.u32 4294901760, %v11261_v42  ;;  %v11264_v60 = vand.u32 4294901760, %v11263_v14  ;;  %v11276_v42 = vand.u32 4294901760, %v11226_v31  ;;  %v11281_v14 = vld [vmem:[#allocation28_spill] sm:$0xff] }
 0x12d   :  { %7636 = vmatpush3.bf16.msra.mxu0 %v11249_v18  ;;  %7828 = vmatpush3.bf16.msra.mxu1 %v11249_v18  ;;  %v11259_v18 = vand.u32 4294901760, %v11211_v57 }
 0x12e   :  { %6334 = vmatprep.mubr.f32.mxu0 %v9428_v20  ;;  %6670 = vmatprep.mubr.f32.mxu1 %v11252_v7  ;;  %11258 = vst [vmem:[#allocation11_spill] sm:$0xff] %v9733_v16  ;;  %v9749_v1 = vpack.c.bf16 %v11264_v60, %v11262_v22  ;;  %v11279_v22 = vld [vmem:[#allocation27_spill] sm:$0xff]  ;;  %v11282_v60 = vand.u32 4294901760, %v11281_v14  ;;  %v11306_v14 = vld [vmem:[#allocation37_spill] sm:$0xff] }
 0x12f   :  { %7638 = vmatprep.subr.bf16.mxu0 %v11253_v45  ;;  %7830 = vmatprep.subr.bf16.mxu1 %v11253_v45 }
 0x130   :  { %6335 = vmatmul.mubr.f32.gmra.mrb[14].mxu0 %v9441_v38  ;;  %6671 = vmatmul.mubr.f32.gmra.mrb[14].mxu1 %v9447_v46  ;;  %11265 = vst [vmem:[#allocation53_spill] sm:$0xff] %v9749_v1 }
 0x131   :  { %7640 = vmatpush3.bf16.msra.mxu0 %v11253_v45  ;;  %7832 = vmatpush3.bf16.msra.mxu1 %v11253_v45  ;;  %v11267_v45 = vand.u32 4294901760, %v11221_v28 }
 0x132   :  { %6369 = vmatprep.mubr.f32.mxu0 %v11259_v18  ;;  %6705 = vmatprep.mubr.f32.mxu1 %v11260_v23  ;;  %v11268_v23 = vand.u32 4294901760, %v11222_v12  ;;  %v11269_v18 = vand.u32 4294901760, %v11223_v19  ;;  %v11277_v12 = vand.u32 4294901760, %v11227_v29  ;;  %v11278_v19 = vand.u32 4294901760, %v11228_v26 }
 0x133   :  { %7642 = vmatprep.subr.bf16.mxu0 %v9733_v16  ;;  %7834 = vmatprep.subr.bf16.mxu1 %v9733_v16  ;;  %v11286_v26 = vand.u32 4294901760, %v11232_v47  ;;  %v11287_v29 = vand.u32 4294901760, %v11233_v0  ;;  %v11295_v0 = vand.u32 4294901760, %v11237_v25  ;;  %v11296_v47 = vand.u32 4294901760, %v11238_v17 }
 0x134   :  { %6370 = vmatmul.mubr.f32.vlgmr.msra.gmra.mrb[0].mxu0 %v11266_v2  ;;  %6706 = vmatmul.mubr.f32.vlgmr.msra.gmra.mrb[0].mxu1 %v11267_v45  ;;  %v11272_v2 = vld [vmem:[#allocation26_spill] sm:$0xff]  ;;  %v11275_v45 = vand.u32 4294901760, %v11225_v50  ;;  %v11280_v50 = vand.u32 4294901760, %v11279_v22  ;;  %v11302_v22 = vand.u32 4294901760, %v11240_v11  ;;  %v11304_v17 = vand.u32 4294901760, %v11242_v21 }
 0x135   :  { %7644 = vmatpush3.bf16.msra.mxu0 %v9733_v16  ;;  %7836 = vmatpush3.bf16.msra.mxu1 %v9733_v16  ;;  %v11273_v57 = vand.u32 4294901760, %v11272_v2  ;;  %v11305_v25 = vand.u32 4294901760, %v11243_v24  ;;  %v11307_v11 = vand.u32 4294901760, %v11306_v14  ;;  %v11313_v24 = vand.u32 4294901760, %v11247_v58  ;;  %v11342_v14 = vld [vmem:[#allocation96_spill] sm:$0xff] }
 0x136   :  { %6372 = vmatprep.mubr.f32.mxu0 %v11268_v23  ;;  %6708 = vmatprep.mubr.f32.mxu1 %v11269_v18  ;;  %v9785_v31 = vpack.c.bf16 %v11282_v60, %v11280_v50  ;;  %v11284_v23 = vand.u32 4294901760, %v11230_v39  ;;  %v11285_v18 = vand.u32 4294901760, %v11231_v33  ;;  %v11289_v39 = vand.u32 4294901760, %v11288_v51  ;;  %v11308_v60 = vld [vmem:[#allocation38_spill] sm:$0xff]  ;;  %v11317_v51 = vld [vmem:[#allocation40_spill] sm:$0xff] }
 0x137   :  { %7646 = vmatprep.subr.bf16.mxu0 %v9749_v1  ;;  %7838 = vmatprep.subr.bf16.mxu1 %v9749_v1  ;;  %v9767_v28 = vpack.c.bf16 %v11273_v57, %v11271_v15  ;;  %v11290_v15 = vld [vmem:[#allocation32_spill] sm:$0xff]  ;;  %v11293_v57 = vand.u32 4294901760, %v11235_v8  ;;  %v11303_v50 = vand.u32 4294901760, %v11241_v10  ;;  %v11314_v21 = vand.u32 4294901760, %v11248_v40 }
 0x138   :  { %6373 = vmatmul.mubr.f32.gmra.mrb[2].mxu0 %v11275_v45  ;;  %6709 = vmatmul.mubr.f32.gmra.mrb[2].mxu1 %v11276_v42  ;;  %11283 = vst [vmem:[#allocation55_spill] sm:$0xff] %v9785_v31  ;;  %v11291_v2 = vand.u32 4294901760, %v11290_v15  ;;  %v11294_v45 = vand.u32 4294901760, %v11236_v32  ;;  %v11297_v42 = vld [vmem:[#allocation33_spill] sm:$0xff]  ;;  %v11320_v15 = vand.u32 4294901760, %v11250_v27  ;;  %v11322_v58 = vand.u32 4294901760, %v9428_v20 }
 0x139   :  { %11274 = vst [vmem:[#allocation54_spill] sm:$0xff] %v9767_v28  ;;  %7648 = vmatpush3.bf16.msra.mxu0 %v9749_v1  ;;  %7840 = vmatpush3.bf16.msra.mxu1 %v9749_v1  ;;  %v11298_v8 = vand.u32 4294901760, %v11297_v42  ;;  %v11323_v40 = vand.u32 4294901760, %v11252_v7  ;;  %v11324_v27 = vand.u32 4294901760, %v9441_v38  ;;  %v11326_v7 = vld [vmem:[#allocation15_spill] sm:$0xff]  ;;  %v11327_v20 = vld [vmem:[#allocation69_spill] sm:$0xff] }
 0x13a   :  { %6375 = vmatprep.mubr.f32.mxu0 %v11277_v12  ;;  %6711 = vmatprep.mubr.f32.mxu1 %v11278_v19  ;;  %v9803_v33 = vpack.c.bf16 %v11291_v2, %v11289_v39  ;;  %v11299_v12 = vld [vmem:[#allocation34_spill] sm:$0xff]  ;;  %v11318_v39 = vand.u32 4294901760, %v11317_v51  ;;  %v11321_v2 = vand.u32 4294901760, %v11251_v55  ;;  %v11325_v55 = vand.u32 4294901760, %v9447_v46  ;;  %v11329_v46 = vld [vmem:[#allocation71_spill] sm:$0xff] }
 0x13b   :  { %7650 = vmatprep.subr.bf16.mxu0 %v9767_v28  ;;  %7842 = vmatprep.subr.bf16.mxu1 %v9767_v28  ;;  %v11300_v19 = vand.u32 4294901760, %v11299_v12  ;;  %v11328_v38 = vld [vmem:[#allocation70_spill] sm:$0xff]  ;;  %v11334_v42 = vld [vmem:[#allocation87_spill] sm:$0xff] }
 0x13c   :  { %6376 = vmatmul.mubr.f32.gmra.mrb[4].mxu0 %v11284_v23  ;;  %6712 = vmatmul.mubr.f32.gmra.mrb[4].mxu1 %v11285_v18  ;;  %11292 = vst [vmem:[#allocation56_spill] sm:$0xff] %v9803_v33  ;;  %v11309_v23 = vand.u32 4294901760, %v11308_v60  ;;  %v11311_v18 = vand.u32 4294901760, %v11245_v9  ;;  %v11336_v12 = vld [vmem:[#allocation19_spill] sm:$0xff] }
 0x13d   :  { %7652 = vmatpush3.bf16.msra.mxu0 %v9767_v28  ;;  %7844 = vmatpush3.bf16.msra.mxu1 %v9767_v28  ;;  %v9821_v32 = vpack.c.bf16 %v11300_v19, %v11298_v8  ;;  %v11335_v8 = vld [vmem:[#allocation88_spill] sm:$0xff]  ;;  %v11337_v19 = vld [vmem:[#allocation89_spill] sm:$0xff] }
 0x13e   :  { %6378 = vmatprep.mubr.f32.mxu0 %v11286_v26  ;;  %6714 = vmatprep.mubr.f32.mxu1 %v11287_v29  ;;  %v9839_v10 = vpack.c.bf16 %v11309_v23, %v11307_v11  ;;  %v11312_v26 = vand.u32 4294901760, %v11246_v30  ;;  %v11315_v29 = vld [vmem:[#allocation39_spill] sm:$0xff]  ;;  %v11350_v23 = vld [vmem:[#allocation106_spill] sm:$0xff] }
 0x13f   :  { %7654 = vmatprep.subr.bf16.mxu0 %v9785_v31  ;;  %7846 = vmatprep.subr.bf16.mxu1 %v9785_v31  ;;  %11301 = vst [vmem:[#allocation57_spill] sm:$0xff] %v9821_v32  ;;  %v11316_v9 = vand.u32 4294901760, %v11315_v29  ;;  %v11343_v11 = vld [vmem:[#allocation99_spill] sm:$0xff] }
 0x140   :  { %6379 = vmatmul.mubr.f32.gmra.mrb[6].mxu0 %v11293_v57  ;;  %6715 = vmatmul.mubr.f32.gmra.mrb[6].mxu1 %v11294_v45  ;;  %11310 = vst [vmem:[#allocation58_spill] sm:$0xff] %v9839_v10  ;;  %v11330_v57 = vld [vmem:[#allocation72_spill] sm:$0xff] }
 0x141   :  { %7656 = vmatpush3.bf16.msra.mxu0 %v9785_v31  ;;  %7848 = vmatpush3.bf16.msra.mxu1 %v9785_v31  ;;  %v9857_v30 = vpack.c.bf16 %v11318_v39, %v11316_v9  ;;  %v11331_v45 = vld [vmem:[#allocation16_spill] sm:$0xff] }
 0x142   :  { %6381 = vmatprep.mubr.f32.mxu0 %v11295_v0  ;;  %6717 = vmatprep.mubr.f32.mxu1 %v11296_v47  ;;  %v11332_v0 = vld [vmem:[#allocation76_spill] sm:$0xff] }
 0x143   :  { %7658 = vmatprep.subr.bf16.mxu0 %v9803_v33  ;;  %7850 = vmatprep.subr.bf16.mxu1 %v9803_v33  ;;  %11319 = vst [vmem:[#allocation59_spill] sm:$0xff] %v9857_v30  ;;  %v11333_v47 = vld [vmem:[#allocation80_spill] sm:$0xff] }
 0x144   :  { %6382 = vmatmul.mubr.f32.gmra.mrb[8].mxu0 %v11302_v22  ;;  %6718 = vmatmul.mubr.f32.gmra.mrb[8].mxu1 %v11303_v50  ;;  %v11338_v22 = vld [vmem:[#allocation90_spill] sm:$0xff]  ;;  %v11339_v50 = vld [vmem:[#allocation91_spill] sm:$0xff] }
 0x145   :  { %7660 = vmatpush3.bf16.msra.mxu0 %v9803_v33  ;;  %7852 = vmatpush3.bf16.msra.mxu1 %v9803_v33 }
 0x146   :  { %6384 = vmatprep.mubr.f32.mxu0 %v11304_v17  ;;  %6720 = vmatprep.mubr.f32.mxu1 %v11305_v25  ;;  %v11340_v17 = vld [vmem:[#allocation92_spill] sm:$0xff]  ;;  %v11341_v25 = vld [vmem:[#allocation22_spill] sm:$0xff] }
 0x147   :  { %7662 = vmatprep.subr.bf16.mxu0 %v9821_v32  ;;  %7854 = vmatprep.subr.bf16.mxu1 %v9821_v32 }
 0x148   :  { %6385 = vmatmul.mubr.f32.gmra.mrb[10].mxu0 %v11311_v18  ;;  %6721 = vmatmul.mubr.f32.gmra.mrb[10].mxu1 %v11312_v26  ;;  %v9992_v18 = vand.u32 4294901760, %v11350_v23 }
 0x149   :  { %7664 = vmatpush3.bf16.msra.mxu0 %v9821_v32  ;;  %7856 = vmatpush3.bf16.msra.mxu1 %v9821_v32 }
 0x14a   :  { %6387 = vmatprep.mubr.f32.mxu0 %v11313_v24  ;;  %6723 = vmatprep.mubr.f32.mxu1 %v11314_v21  ;;  %v11352_v24 = vld [vmem:[#allocation107_spill] sm:$0xff]  ;;  %v10028_v9 = vsub.f32 %v11350_v23, %v9992_v18 }
 0x14b   :  { %7666 = vmatprep.subr.bf16.mxu0 %v9839_v10  ;;  %7858 = vmatprep.subr.bf16.mxu1 %v9839_v10 }
 0x14c   :  { %6388 = vmatmul.mubr.f32.gmra.mrb[12].mxu0 %v11320_v15  ;;  %6724 = vmatmul.mubr.f32.gmra.mrb[12].mxu1 %v11321_v2  ;;  %11355 = vst [vmem:[#allocation63_spill] sm:$0xff] %v10028_v9 }
 0x14d   :  { %7668 = vmatpush3.bf16.msra.mxu0 %v9839_v10  ;;  %7860 = vmatpush3.bf16.msra.mxu1 %v9839_v10 }
 0x14e   :  { %6390 = vmatprep.mubr.f32.mxu0 %v11322_v58  ;;  %6726 = vmatprep.mubr.f32.mxu1 %v11323_v40  ;;  %v11358_v58 = vld [vmem:[#allocation109_spill] sm:$0xff] }
 0x14f   :  { %7670 = vmatprep.subr.bf16.mxu0 %v9857_v30  ;;  %7862 = vmatprep.subr.bf16.mxu1 %v9857_v30  ;;  %v10047_v40 = vand.u32 4294901760, %v11358_v58 }
 0x150   :  { %6391 = vmatmul.mubr.f32.gmra.mrb[14].mxu0 %v11324_v27  ;;  %6727 = vmatmul.mubr.f32.gmra.mrb[14].mxu1 %v11325_v55  ;;  %v11359_v27 = vld [vmem:[#allocation110_spill] sm:$0xff] }
 0x151   :  { %7672 = vmatpush3.bf16.msra.mxu0 %v9857_v30  ;;  %7864 = vmatpush3.bf16.msra.mxu1 %v9857_v30  ;;  %v10050_v55 = vand.u32 4294901760, %v11359_v27 }
 0x152   :  { %6425 = vmatprep.mubr.f32.mxu0 %v9087_v5  ;;  %6761 = vmatprep.mubr.f32.mxu1 %v9089_v4 }
 0x153   :  { %7674 = vmatprep.subr.bf16.mxu0 %v11218_v36  ;;  %7866 = vmatprep.subr.bf16.mxu1 %v11218_v36 }
 0x154   :  { %6426 = vmatmul.mubr.f32.vlgmr.msra.gmra.mrb[0].mxu0 %v9091_v63  ;;  %6762 = vmatmul.mubr.f32.vlgmr.msra.gmra.mrb[0].mxu1 %v9093_v62 }
 0x155   :  { %7676 = vmatpush3.bf16.msra.mxu0 %v11218_v36  ;;  %7868 = vmatpush3.bf16.msra.mxu1 %v11218_v36 }
 0x156   :  { %6428 = vmatprep.mubr.f32.mxu0 %v9095_v53  ;;  %6764 = vmatprep.mubr.f32.mxu1 %v9097_v52 }
 0x157   :  { %7678 = vmatprep.subr.bf16.mxu0 %v11224_v54  ;;  %7870 = vmatprep.subr.bf16.mxu1 %v11224_v54 }
 0x158   :  { %6429 = vmatmul.mubr.f32.gmra.mrb[2].mxu0 %v9099_v44  ;;  %6765 = vmatmul.mubr.f32.gmra.mrb[2].mxu1 %v9101_v43 }
 0x159   :  { %7680 = vmatpush3.bf16.msra.mxu0 %v11224_v54  ;;  %7872 = vmatpush3.bf16.msra.mxu1 %v11224_v54 }
 0x15a   :  { %6431 = vmatprep.mubr.f32.mxu0 %v9181_v37  ;;  %6767 = vmatprep.mubr.f32.mxu1 %v9183_v35 }
 0x15b   :  { %7682 = vmatprep.subr.bf16.mxu0 %v11229_v41  ;;  %7874 = vmatprep.subr.bf16.mxu1 %v11229_v41 }
 0x15c   :  { %6432 = vmatmul.mubr.f32.gmra.mrb[4].mxu0 %v9185_v49  ;;  %6768 = vmatmul.mubr.f32.gmra.mrb[4].mxu1 %v9189_v13 }
 0x15d   :  { %7684 = vmatpush3.bf16.msra.mxu0 %v11229_v41  ;;  %7876 = vmatpush3.bf16.msra.mxu1 %v11229_v41 }
 0x15e   :  { %6434 = vmatprep.mubr.f32.mxu0 %v9191_v3  ;;  %6770 = vmatprep.mubr.f32.mxu1 %v9193_v34 }
 0x15f   :  { %7686 = vmatprep.subr.bf16.mxu0 %v11234_v6  ;;  %7878 = vmatprep.subr.bf16.mxu1 %v11234_v6 }
 0x160   :  { %6435 = vmatmul.mubr.f32.gmra.mrb[6].mxu0 %v9208_v61  ;;  %6771 = vmatmul.mubr.f32.gmra.mrb[6].mxu1 %v9219_v48 }
 0x161   :  { %7688 = vmatpush3.bf16.msra.mxu0 %v11234_v6  ;;  %7880 = vmatpush3.bf16.msra.mxu1 %v11234_v6 }
 0x162   :  { %6437 = vmatprep.mubr.f32.mxu0 %v9287_v56  ;;  %6773 = vmatprep.mubr.f32.mxu1 %v9289_v59 }
 0x163   :  { %7690 = vmatprep.subr.bf16.mxu0 %v11326_v7  ;;  %7882 = vmatprep.subr.bf16.mxu1 %v11326_v7 }
 0x164   :  { %6438 = vmatmul.mubr.f32.gmra.mrb[8].mxu0 %v11327_v20  ;;  %6774 = vmatmul.mubr.f32.gmra.mrb[8].mxu1 %v11328_v38 }
 0x165   :  { %7692 = vmatpush3.bf16.msra.mxu0 %v11326_v7  ;;  %7884 = vmatpush3.bf16.msra.mxu1 %v11326_v7 }
 0x166   :  { %6440 = vmatprep.mubr.f32.mxu0 %v11329_v46  ;;  %6776 = vmatprep.mubr.f32.mxu1 %v11330_v57 }
 0x167   :  { %7694 = vmatprep.subr.bf16.mxu0 %v11331_v45  ;;  %7886 = vmatprep.subr.bf16.mxu1 %v11331_v45 }
 0x168   :  { %6441 = vmatmul.mubr.f32.gmra.mrb[10].mxu0 %v11332_v0  ;;  %6777 = vmatmul.mubr.f32.gmra.mrb[10].mxu1 %v11333_v47 }
 0x169   :  { %7696 = vmatpush3.bf16.msra.mxu0 %v11331_v45  ;;  %7888 = vmatpush3.bf16.msra.mxu1 %v11331_v45 }
 0x16a   :  { %6443 = vmatprep.mubr.f32.mxu0 %v11334_v42  ;;  %6779 = vmatprep.mubr.f32.mxu1 %v11335_v8 }
 0x16b   :  { %7698 = vmatprep.subr.bf16.mxu0 %v11336_v12  ;;  %7890 = vmatprep.subr.bf16.mxu1 %v11336_v12 }
 0x16c   :  { %6444 = vmatmul.mubr.f32.gmra.mrb[12].mxu0 %v11337_v19  ;;  %6780 = vmatmul.mubr.f32.gmra.mrb[12].mxu1 %v11338_v22 }
 0x16d   :  { %7700 = vmatpush3.bf16.msra.mxu0 %v11336_v12  ;;  %7892 = vmatpush3.bf16.msra.mxu1 %v11336_v12 }
 0x16e   :  { %6446 = vmatprep.mubr.f32.mxu0 %v11339_v50  ;;  %6782 = vmatprep.mubr.f32.mxu1 %v11340_v17 }
 0x16f   :  { %7702 = vmatprep.subr.bf16.mxu0 %v11341_v25  ;;  %7894 = vmatprep.subr.bf16.mxu1 %v11341_v25 }
 0x170   :  { %6447 = vmatmul.mubr.f32.gmra.mrb[14].mxu0 %v11342_v14  ;;  %6783 = vmatmul.mubr.f32.gmra.mrb[14].mxu1 %v11343_v11 }
 0x171   :  { %7704 = vmatpush3.bf16.msra.mxu0 %v11341_v25  ;;  %7896 = vmatpush3.bf16.msra.mxu1 %v11341_v25 }
 0x172   :  { %6481 = vmatprep.mubr.f32.mxu0 %v9087_v5  ;;  %6817 = vmatprep.mubr.f32.mxu1 %v9089_v4  ;;  %v11347_v4 = vld [vmem:[#allocation103_spill] sm:$0xff] }
 0x173   :  { %7898 = vmatprep.subr.bf16.mxu0 %v11218_v36  ;;  %8090 = vmatprep.subr.bf16.mxu1 %v11218_v36  ;;  %v9975_v5 = vand.u32 4294901760, %v11347_v4 }
 0x174   :  { %6482 = vmatmul.mubr.f32.vlgmr.msra.gmra.mrb[0].mxu0 %v9091_v63  ;;  %6818 = vmatmul.mubr.f32.vlgmr.msra.gmra.mrb[0].mxu1 %v9093_v62  ;;  %v11346_v62 = vld [vmem:[#allocation102_spill] sm:$0xff] }
 0x175   :  { %7900 = vmatpush3.bf16.msra.mxu0 %v11218_v36  ;;  %8092 = vmatpush3.bf16.msra.mxu1 %v11218_v36  ;;  %v9972_v63 = vand.u32 4294901760, %v11346_v62  ;;  %v10008_v26 = vsub.f32 %v11347_v4, %v9975_v5  ;;  %v11362_v4 = vld [vmem:[#allocation112_spill] sm:$0xff] }
 0x176   :  { %6484 = vmatprep.mubr.f32.mxu0 %v9095_v53  ;;  %6820 = vmatprep.mubr.f32.mxu1 %v9097_v52  ;;  %v11344_v52 = vld [vmem:[#allocation100_spill] sm:$0xff] }
 0x177   :  { %7902 = vmatprep.subr.bf16.mxu0 %v11224_v54  ;;  %8094 = vmatprep.subr.bf16.mxu1 %v11224_v54  ;;  %v9962_v53 = vand.u32 4294901760, %v11344_v52  ;;  %11351 = vst [vmem:[#allocation60_spill] sm:$0xff] %v10008_v26  ;;  %v10979_v15 = vand.u32 4294901760, %v10008_v26 }
 0x178   :  { %6485 = vmatmul.mubr.f32.gmra.mrb[2].mxu0 %v9099_v44  ;;  %6821 = vmatmul.mubr.f32.gmra.mrb[2].mxu1 %v9101_v43  ;;  %v11345_v43 = vld [vmem:[#allocation101_spill] sm:$0xff] }
 0x179   :  { %7904 = vmatpush3.bf16.msra.mxu0 %v11224_v54  ;;  %8096 = vmatpush3.bf16.msra.mxu1 %v11224_v54  ;;  %v9969_v44 = vand.u32 4294901760, %v11345_v43 }
 0x17a   :  { %6487 = vmatprep.mubr.f32.mxu0 %v9181_v37  ;;  %6823 = vmatprep.mubr.f32.mxu1 %v9183_v35  ;;  %v9983_v37 = vsub.f32 %v11344_v52, %v9962_v53  ;;  %v11348_v35 = vld [vmem:[#allocation104_spill] sm:$0xff] }
 0x17b   :  { %7906 = vmatprep.subr.bf16.mxu0 %v11229_v41  ;;  %8098 = vmatprep.subr.bf16.mxu1 %v11229_v41 }
 0x17c   :  { %6488 = vmatmul.mubr.f32.gmra.mrb[4].mxu0 %v9185_v49  ;;  %6824 = vmatmul.mubr.f32.gmra.mrb[4].mxu1 %v9189_v13  ;;  %v9986_v49 = vand.u32 4294901760, %v11348_v35  ;;  %v11349_v13 = vld [vmem:[#allocation105_spill] sm:$0xff] }
 0x17d   :  { %7908 = vmatpush3.bf16.msra.mxu0 %v11229_v41  ;;  %8100 = vmatpush3.bf16.msra.mxu1 %v11229_v41  ;;  %v9989_v60 = vand.u32 4294901760, %v11349_v13  ;;  %v11410_v41 = vld [vmem:[#allocation29_spill] sm:$0xff] }
 0x17e   :  { %6490 = vmatprep.mubr.f32.mxu0 %v9191_v3  ;;  %6826 = vmatprep.mubr.f32.mxu1 %v9193_v34  ;;  %v10000_v3 = vsub.f32 %v11345_v43, %v9969_v44  ;;  %v10004_v34 = vsub.f32 %v11346_v62, %v9972_v63  ;;  %v10020_v21 = vsub.f32 %v11348_v35, %v9986_v49  ;;  %v10072_v35 = vand.u32 4294901760, %v11362_v4 }
 0x17f   :  { %7910 = vmatprep.subr.bf16.mxu0 %v11234_v6  ;;  %8102 = vmatprep.subr.bf16.mxu1 %v11234_v6  ;;  %v10024_v29 = vsub.f32 %v11349_v13, %v9989_v60  ;;  %v11363_v13 = vld [vmem:[#allocation113_spill] sm:$0xff] }
 0x180   :  { %6491 = vmatmul.mubr.f32.gmra.mrb[6].mxu0 %v9208_v61  ;;  %6827 = vmatmul.mubr.f32.gmra.mrb[6].mxu1 %v9219_v48  ;;  %v10011_v61 = vand.u32 4294901760, %v11352_v24  ;;  %v10976_v48 = vand.u32 4294901760, %v9983_v37  ;;  %11353 = vst [vmem:[#allocation61_spill] sm:$0xff] %v10020_v21  ;;  %v10977_v51 = vand.u32 4294901760, %v10000_v3  ;;  %v10978_v39 = vand.u32 4294901760, %v10004_v34 }
 0x181   :  { %7912 = vmatpush3.bf16.msra.mxu0 %v11234_v6  ;;  %8104 = vmatpush3.bf16.msra.mxu1 %v11234_v6  ;;  %11354 = vst [vmem:[#allocation62_spill] sm:$0xff] %v10024_v29  ;;  %v10075_v23 = vand.u32 4294901760, %v11363_v13 }
 0x182   :  { %6493 = vmatprep.mubr.f32.mxu0 %v9287_v56  ;;  %6829 = vmatprep.mubr.f32.mxu1 %v9289_v59  ;;  %v11356_v59 = vld [vmem:[#allocation108_spill] sm:$0xff]  ;;  %v10042_v2 = vsub.f32 %v11352_v24, %v10011_v61  ;;  %v10060_v52 = vsub.f32 %v9983_v37, %v10976_v48  ;;  %v11364_v24 = vld [vmem:[#allocation114_spill] sm:$0xff] }
 0x183   :  { %7914 = vmatprep.subr.bf16.mxu0 %v11326_v7  ;;  %8106 = vmatprep.subr.bf16.mxu1 %v11326_v7  ;;  %v10033_v56 = vand.u32 4294901760, %v11356_v59  ;;  %v10078_v48 = vand.u32 4294901760, %v11364_v24  ;;  %v10140_v10 = vsub.f32 %v11363_v13, %v10075_v23 }
 0x184   :  { %6494 = vmatmul.mubr.f32.gmra.mrb[8].mxu0 %v11327_v20  ;;  %6830 = vmatmul.mubr.f32.gmra.mrb[8].mxu1 %v11328_v38  ;;  %11357 = vst [vmem:[#allocation64_spill] sm:$0xff] %v10042_v2  ;;  %v11360_v20 = vld [vmem:[#allocation111_spill] sm:$0xff] }
 0x185   :  { %7916 = vmatpush3.bf16.msra.mxu0 %v11326_v7  ;;  %8108 = vmatpush3.bf16.msra.mxu1 %v11326_v7  ;;  %v10053_v38 = vand.u32 4294901760, %v11360_v20  ;;  %v10069_v62 = vsub.f32 %v11356_v59, %v10033_v56  ;;  %v10093_v59 = vsub.f32 %v10008_v26, %v10979_v15  ;;  %v11368_v15 = vld [vmem:[#allocation115_spill] sm:$0xff]  ;;  %11373 = vst [vmem:[#allocation77_spill] sm:$0xff] %v10140_v10 }
 0x186   :  { %6496 = vmatprep.mubr.f32.mxu0 %v11329_v46  ;;  %6832 = vmatprep.mubr.f32.mxu1 %v11330_v57  ;;  %v10100_v57 = vsub.f32 %v11358_v58, %v10047_v40  ;;  %v10111_v46 = vand.u32 4294901760, %v11368_v15 }
 0x187   :  { %7918 = vmatprep.subr.bf16.mxu0 %v11331_v45  ;;  %8110 = vmatprep.subr.bf16.mxu1 %v11331_v45  ;;  %11361 = vst [vmem:[#allocation65_spill] sm:$0xff] %v10069_v62 }
 0x188   :  { %6497 = vmatmul.mubr.f32.gmra.mrb[10].mxu0 %v11332_v0  ;;  %6833 = vmatmul.mubr.f32.gmra.mrb[10].mxu1 %v11333_v47  ;;  %v4164_v0 = vsub.f32 %v10000_v3, %v10977_v51  ;;  %v10088_v47 = vsub.f32 %v10004_v34, %v10978_v39  ;;  %11365 = vst [vmem:[#allocation66_spill] sm:$0xff] %v10100_v57 }
 0x189   :  { %7920 = vmatpush3.bf16.msra.mxu0 %v11331_v45  ;;  %8112 = vmatpush3.bf16.msra.mxu1 %v11331_v45  ;;  %v10104_v51 = vsub.f32 %v11359_v27, %v10050_v55  ;;  %v10108_v39 = vsub.f32 %v11360_v20, %v10053_v38  ;;  %v11370_v27 = vand.u32 4294901760, %v10024_v29  ;;  %v11371_v20 = vand.u32 4294901760, %v10028_v9 }
 0x18a   :  { %6499 = vmatprep.mubr.f32.mxu0 %v11334_v42  ;;  %6835 = vmatprep.mubr.f32.mxu1 %v11335_v8  ;;  %v2843_v42 = vand.u32 4294901760, %v10060_v52  ;;  %v11369_v8 = vand.u32 4294901760, %v10020_v21 }
 0x18b   :  { %11366 = vst [vmem:[#allocation73_spill] sm:$0xff] %v10104_v51  ;;  %11367 = vst [vmem:[#allocation74_spill] sm:$0xff] %v10108_v39  ;;  %7922 = vmatprep.subr.bf16.mxu0 %v11336_v12  ;;  %8114 = vmatprep.subr.bf16.mxu1 %v11336_v12  ;;  %v10124_v43 = vsub.f32 %v10024_v29, %v11370_v27  ;;  %v10129_v30 = vsub.f32 %v10028_v9, %v11371_v20  ;;  %v4175_v20 = vand.u32 4294901760, %v10093_v59  ;;  %v11377_v59 = vld [vmem:[#allocation116_spill] sm:$0xff]  ;;  %v11413_v9 = vld [vmem:[#allocation51_spill] sm:$0xff] }
 0x18c   :  { %v10119_v58 = vsub.f32 %v10020_v21, %v11369_v8  ;;  %6500 = vmatmul.mubr.f32.gmra.mrb[12].mxu0 %v11337_v19  ;;  %6836 = vmatmul.mubr.f32.gmra.mrb[12].mxu1 %v11338_v22  ;;  %v10136_v8 = vsub.f32 %v11362_v4, %v10072_v35  ;;  %v10144_v27 = vsub.f32 %v11364_v24, %v10078_v48  ;;  %v4165_v19 = vand.u32 4294901760, %v4164_v0 }
 0x18d   :  { %7924 = vmatpush3.bf16.msra.mxu0 %v11336_v12  ;;  %8116 = vmatpush3.bf16.msra.mxu1 %v11336_v12  ;;  %v2853_v22 = vand.u32 4294901760, %v10088_v47  ;;  %v11375_v4 = vand.u32 4294901760, %v10042_v2  ;;  %v10160_v0 = vsub.f32 %v11368_v15, %v10111_v46  ;;  %v11379_v15 = vand.u32 4294901760, %v10069_v62  ;;  %v11389_v12 = vld [vmem:[#allocation120_spill] sm:$0xff] }
 0x18e   :  { %11372 = vst [vmem:[#allocation75_spill] sm:$0xff] %v10136_v8  ;;  %11374 = vst [vmem:[#allocation78_spill] sm:$0xff] %v10144_v27  ;;  %6502 = vmatprep.mubr.f32.mxu0 %v11339_v50  ;;  %6838 = vmatprep.mubr.f32.mxu1 %v11340_v17  ;;  %v2863_v47 = vand.u32 4294901760, %v10119_v58  ;;  %v4185_v50 = vand.u32 4294901760, %v10124_v43  ;;  %v10167_v17 = vand.u32 4294901760, %v11377_v59  ;;  %v2873_v33 = vand.u32 4294901760, %v10129_v30 }
 0x18f   :  { %v4194_v52 = vsub.f32 %v10042_v2, %v11375_v4  ;;  %11376 = vst [vmem:[#allocation79_spill] sm:$0xff] %v10160_v0  ;;  %7926 = vmatprep.subr.bf16.mxu0 %v11341_v25  ;;  %8118 = vmatprep.subr.bf16.mxu1 %v11341_v25  ;;  %v11378_v4 = vld [vmem:[#allocation117_spill] sm:$0xff]  ;;  %v2882_v32 = vsub.f32 %v10069_v62, %v11379_v15  ;;  %v11382_v15 = vand.u32 4294901760, %v10100_v57  ;;  %v11383_v43 = vand.u32 4294901760, %v10104_v51 }
 0x190   :  { %v10170_v13 = vand.u32 4294901760, %v11378_v4  ;;  %6503 = vmatmul.mubr.f32.gmra.mrb[14].mxu0 %v11342_v14  ;;  %6839 = vmatmul.mubr.f32.gmra.mrb[14].mxu1 %v11343_v11  ;;  %v11380_v14 = vld [vmem:[#allocation118_spill] sm:$0xff]  ;;  %v11381_v11 = vld [vmem:[#allocation119_spill] sm:$0xff]  ;;  %v11384_v16 = vand.u32 4294901760, %v10108_v39  ;;  %v10213_v45 = vand.u32 4294901760, %v11389_v12 }
 0x191   :  { %7928 = vmatpush3.bf16.msra.mxu0 %v11341_v25  ;;  %8120 = vmatpush3.bf16.msra.mxu1 %v11341_v25  ;;  %v4195_v31 = vand.u32 4294901760, %v4194_v52  ;;  %v10184_v28 = vand.u32 4294901760, %v11380_v14  ;;  %v10187_v1 = vand.u32 4294901760, %v11381_v11  ;;  %v4204_v58 = vsub.f32 %v10100_v57, %v11382_v15  ;;  %v11385_v25 = vld [vmem:[#allocation23_spill] sm:$0xff] }
 0x192   :  { %6873 = vmatprep.mubr.f32.mxu0 %v2843_v42  ;;  %7209 = vmatprep.mubr.f32.mxu1 %v4165_v19  ;;  %v2892_v24 = vsub.f32 %v10104_v51, %v11383_v43  ;;  %v4214_v30 = vsub.f32 %v10108_v39, %v11384_v16  ;;  %v10203_v42 = vsub.f32 %v11377_v59, %v10167_v17  ;;  %v11388_v15 = vld [vmem:[#allocation67_spill] sm:$0xff]  ;;  %v2883_v16 = vand.u32 4294901760, %v2882_v32  ;;  %v11401_v51 = vld [vmem:[#allocation24_spill] sm:$0xff] }
 0x193   :  { %7930 = vmatprep.subr.bf16.mxu0 %v11385_v25  ;;  %8122 = vmatprep.subr.bf16.mxu1 %v11385_v25  ;;  %v10207_v19 = vsub.f32 %v11378_v4, %v10170_v13  ;;  %v10210_v43 = vand.u32 4294901760, %v11388_v15  ;;  %11390 = vst [vmem:[#allocation93_spill] sm:$0xff] %v10213_v45  ;;  %v11391_v52 = vand.u32 4294901760, %v10136_v8  ;;  %v11392_v59 = vand.u32 4294901760, %v10140_v10 }
 0x194   :  { %11386 = vst [vmem:[#allocation81_spill] sm:$0xff] %v10203_v42  ;;  %6874 = vmatmul.mubr.f32.vlgmr.msra.gmra.mrb[16].mxu0 %v2853_v22  ;;  %7210 = vmatmul.mubr.f32.vlgmr.msra.gmra.mrb[16].mxu1 %v4175_v20  ;;  %v11393_v4 = vand.u32 4294901760, %v10144_v27  ;;  %v10230_v32 = vsub.f32 %v11380_v14, %v10184_v28  ;;  %v10234_v22 = vsub.f32 %v11381_v11, %v10187_v1  ;;  %v11396_v20 = vld [vmem:[#allocation68_spill] sm:$0xff] }
 0x195   :  { %11387 = vst [vmem:[#allocation82_spill] sm:$0xff] %v10207_v19  ;;  %v2902_v7 = vsub.f32 %v10136_v8, %v11391_v52  ;;  %v4224_v6 = vsub.f32 %v10140_v10, %v11392_v59  ;;  %7932 = vmatpush3.bf16.msra.mxu0 %v11385_v25  ;;  %8124 = vmatpush3.bf16.msra.mxu1 %v11385_v25  ;;  %v10237_v52 = vand.u32 4294901760, %v11396_v20  ;;  %v11398_v59 = vld [vmem:[#allocation121_spill] sm:$0xff]  ;;  %v4215_v8 = vand.u32 4294901760, %v4214_v30 }
 0x196   :  { %v10224_v39 = vsub.f32 %v10144_v27, %v11393_v4  ;;  %11394 = vst [vmem:[#allocation94_spill] sm:$0xff] %v10230_v32  ;;  %11395 = vst [vmem:[#allocation95_spill] sm:$0xff] %v10234_v22  ;;  %v10240_v10 = vand.u32 4294901760, %v11398_v59  ;;  %6876 = vmatprep.mubr.f32.mxu0 %v2863_v47  ;;  %7212 = vmatprep.mubr.f32.mxu1 %v4185_v50  ;;  %v4205_v4 = vand.u32 4294901760, %v4204_v58  ;;  %v2893_v27 = vand.u32 4294901760, %v2892_v24  ;;  %v11402_v58 = vld [vmem:[#allocation83_spill] sm:$0xff] }
 0x197   :  { %11397 = vst [vmem:[#allocation97_spill] sm:$0xff] %v10237_v52  ;;  %v11400_v25 = vand.u32 4294901760, %v10160_v0  ;;  %7934 = vmatprep.subr.bf16.mxu0 %v11401_v51  ;;  %8126 = vmatprep.subr.bf16.mxu1 %v11401_v51  ;;  %v10251_v57 = vsub.f32 %v11388_v15, %v10210_v43  ;;  %v10255_v24 = vsub.f32 %v11389_v12, %v10213_v45  ;;  %v2903_v47 = vand.u32 4294901760, %v2902_v7  ;;  %v11406_v12 = vld [vmem:[#allocation84_spill] sm:$0xff] }
 0x198   :  { %11399 = vst [vmem:[#allocation98_spill] sm:$0xff] %v10240_v10  ;;  %6877 = vmatmul.mubr.f32.gmra.mrb[18].mxu0 %v2873_v33  ;;  %7213 = vmatmul.mubr.f32.gmra.mrb[18].mxu1 %v4195_v31  ;;  %v4225_v50 = vand.u32 4294901760, %v4224_v6  ;;  %v10258_v30 = vand.u32 4294901760, %v11402_v58  ;;  %v10269_v33 = vsub.f32 %v11396_v20, %v10237_v52  ;;  %v10273_v6 = vsub.f32 %v11398_v59, %v10240_v10 }
 0x199   :  { %v4234_v14 = vsub.f32 %v10160_v0, %v11400_v25  ;;  %v11404_v25 = vld [vmem:[#allocation122_spill] sm:$0xff]  ;;  %7936 = vmatpush3.bf16.msra.mxu0 %v11401_v51  ;;  %8128 = vmatpush3.bf16.msra.mxu1 %v11401_v51  ;;  %v2913_v31 = vand.u32 4294901760, %v10224_v39  ;;  %v10277_v11 = vand.u32 4294901760, %v11406_v12  ;;  %v11408_v51 = vld [vmem:[#allocation123_spill] sm:$0xff]  ;;  %v11411_v20 = vand.u32 4294901760, %v10203_v42 }
 0x19a   :  { %11403 = vst [vmem:[#allocation17_spill] sm:$0xff] %v10258_v30  ;;  %v10261_v0 = vand.u32 4294901760, %v11404_v25  ;;  %6879 = vmatprep.mubr.f32.mxu0 %v2883_v16  ;;  %7215 = vmatprep.mubr.f32.mxu1 %v4205_v4  ;;  %v10280_v15 = vand.u32 4294901760, %v11408_v51  ;;  %v11412_v16 = vand.u32 4294901760, %v10207_v19  ;;  %v10294_v62 = vsub.f32 %v11402_v58, %v10258_v30 }
 0x19b   :  { %v4235_v7 = vand.u32 4294901760, %v4234_v14  ;;  %11407 = vst [vmem:[#allocation20_spill] sm:$0xff] %v10277_v11  ;;  %7938 = vmatprep.subr.bf16.mxu0 %v11410_v41  ;;  %8130 = vmatprep.subr.bf16.mxu1 %v11410_v41  ;;  %v2922_v59 = vsub.f32 %v10203_v42, %v11411_v20  ;;  %v10301_v20 = vand.u32 4294901760, %v11413_v9  ;;  %v11415_v42 = vld [vmem:[#allocation52_spill] sm:$0xff]  ;;  %v11418_v58 = vand.u32 4294901760, %v10234_v22 }
 0x19c   :  { %11405 = vst [vmem:[#allocation18_spill] sm:$0xff] %v10261_v0  ;;  %11409 = vst [vmem:[#allocation21_spill] sm:$0xff] %v10280_v15  ;;  %v4244_v4 = vsub.f32 %v10207_v19, %v11412_v16  ;;  %6880 = vmatmul.mubr.f32.gmra.mrb[20].mxu0 %v2893_v27  ;;  %7216 = vmatmul.mubr.f32.gmra.mrb[20].mxu1 %v4215_v8  ;;  %v10298_v2 = vsub.f32 %v11404_v25, %v10261_v0  ;;  %v10304_v54 = vand.u32 4294901760, %v11415_v42  ;;  %v11419_v19 = vld [vmem:[#allocation85_spill] sm:$0xff] }
 0x19d   :  { %11414 = vst [vmem:[#allocation25_spill] sm:$0xff] %v10301_v20  ;;  %7940 = vmatpush3.bf16.msra.mxu0 %v11410_v41  ;;  %8132 = vmatpush3.bf16.msra.mxu1 %v11410_v41  ;;  %v11417_v8 = vand.u32 4294901760, %v10230_v32  ;;  %v4254_v16 = vsub.f32 %v10234_v22, %v11418_v58  ;;  %v10318_v39 = vsub.f32 %v11406_v12, %v10277_v11  ;;  %v11423_v58 = vld [vmem:[#allocation30_spill] sm:$0xff]  ;;  %v11424_v14 = vand.u32 4294901760, %v10251_v57 }
 0x19e   :  { %11416 = vst [vmem:[#allocation26_spill] sm:$0xff] %v10304_v54  ;;  %6882 = vmatprep.mubr.f32.mxu0 %v2903_v47  ;;  %7218 = vmatprep.mubr.f32.mxu1 %v4225_v50  ;;  %v10322_v41 = vsub.f32 %v11408_v51, %v10280_v15  ;;  %v2923_v47 = vand.u32 4294901760, %v2922_v59  ;;  %v4245_v50 = vand.u32 4294901760, %v4244_v4  ;;  %v11425_v25 = vand.u32 4294901760, %v10255_v24 }
 0x19f   :  { %v2932_v27 = vsub.f32 %v10230_v32, %v11417_v8  ;;  %v10325_v8 = vand.u32 4294901760, %v11419_v19  ;;  %v11421_v32 = vld [vmem:[#allocation86_spill] sm:$0xff]  ;;  %7942 = vmatprep.subr.bf16.mxu0 %v11423_v58  ;;  %8134 = vmatprep.subr.bf16.mxu1 %v11423_v58  ;;  %v2942_v12 = vsub.f32 %v10251_v57, %v11424_v14  ;;  %v10342_v26 = vsub.f32 %v11413_v9, %v10301_v20 }
 0x1a0   :  { %v10328_v29 = vand.u32 4294901760, %v11421_v32  ;;  %v4264_v51 = vsub.f32 %v10255_v24, %v11425_v25  ;;  %6883 = vmatmul.mubr.f32.gmra.mrb[22].mxu0 %v2913_v31  ;;  %7219 = vmatmul.mubr.f32.gmra.mrb[22].mxu1 %v4235_v7  ;;  %v10346_v59 = vsub.f32 %v11415_v42, %v10304_v54  ;;  %v4255_v14 = vand.u32 4294901760, %v4254_v16  ;;  %v11428_v16 = vld [vmem:[#allocation35_spill] sm:$0xff]  ;;  %v11432_v42 = vld [vmem:[#allocation36_spill] sm:$0xff] }
 0x1a1   :  { %11420 = vst [vmem:[#allocation27_spill] sm:$0xff] %v10325_v8  ;;  %7944 = vmatpush3.bf16.msra.mxu0 %v11423_v58  ;;  %8136 = vmatpush3.bf16.msra.mxu1 %v11423_v58  ;;  %v2933_v4 = vand.u32 4294901760, %v2932_v27  ;;  %v11426_v31 = vand.u32 4294901760, %v10269_v33  ;;  %v11427_v25 = vand.u32 4294901760, %v10273_v6  ;;  %v11037_v9 = vand.u32 4294901760, %v10318_v39 }
 0x1a2   :  { %11422 = vst [vmem:[#allocation28_spill] sm:$0xff] %v10328_v29  ;;  %6885 = vmatprep.mubr.f32.mxu0 %v2923_v47  ;;  %7221 = vmatprep.mubr.f32.mxu1 %v4245_v50  ;;  %v10360_v22 = vsub.f32 %v11419_v19, %v10325_v8  ;;  %v10364_v27 = vsub.f32 %v11421_v32, %v10328_v29  ;;  %v2943_v58 = vand.u32 4294901760, %v2942_v12  ;;  %v11429_v47 = vand.u32 4294901760, %v10294_v62 }
 0x1a3   :  { %v2952_v7 = vsub.f32 %v10269_v33, %v11426_v31  ;;  %v4274_v21 = vsub.f32 %v10273_v6, %v11427_v25  ;;  %7946 = vmatprep.subr.bf16.mxu0 %v11428_v16  ;;  %8138 = vmatprep.subr.bf16.mxu1 %v11428_v16  ;;  %v4265_v31 = vand.u32 4294901760, %v4264_v51  ;;  %v11430_v25 = vand.u32 4294901760, %v10298_v2 }
 0x1a4   :  { %6886 = vmatmul.mubr.f32.gmra.mrb[24].mxu0 %v2933_v4  ;;  %7222 = vmatmul.mubr.f32.gmra.mrb[24].mxu1 %v4255_v14  ;;  %v2962_v50 = vsub.f32 %v10294_v62, %v11429_v47  ;;  %v2972_v4 = vsub.f32 %v10318_v39, %v11037_v9  ;;  %v11431_v14 = vand.u32 4294901760, %v10322_v41 }
 0x1a5   :  { %v4284_v19 = vsub.f32 %v10298_v2, %v11430_v25  ;;  %7948 = vmatpush3.bf16.msra.mxu0 %v11428_v16  ;;  %8140 = vmatpush3.bf16.msra.mxu1 %v11428_v16  ;;  %v2953_v12 = vand.u32 4294901760, %v2952_v7  ;;  %v4275_v51 = vand.u32 4294901760, %v4274_v21  ;;  %v11038_v25 = vand.u32 4294901760, %v10360_v22 }
 0x1a6   :  { %6888 = vmatprep.mubr.f32.mxu0 %v2943_v58  ;;  %7224 = vmatprep.mubr.f32.mxu1 %v4265_v31  ;;  %v4294_v47 = vsub.f32 %v10322_v41, %v11431_v14  ;;  %v2963_v21 = vand.u32 4294901760, %v2962_v50  ;;  %v11433_v16 = vand.u32 4294901760, %v10342_v26  ;;  %v11434_v31 = vand.u32 4294901760, %v10346_v59 }
 0x1a7   :  { %7950 = vmatprep.subr.bf16.mxu0 %v11432_v42  ;;  %8142 = vmatprep.subr.bf16.mxu1 %v11432_v42  ;;  %v4285_v7 = vand.u32 4294901760, %v4284_v19  ;;  %v2973_v9 = vand.u32 4294901760, %v2972_v4  ;;  %v2992_v50 = vsub.f32 %v10360_v22, %v11038_v25  ;;  %v11435_v19 = vand.u32 4294901760, %v10364_v27  ;;  %v11461_v25 = vld [vmem:[#allocation79_spill] sm:$0xff] }
 0x1a8   :  { %6889 = vmatmul.mubr.f32.gmra.mrb[26].mxu0 %v2953_v12  ;;  %7225 = vmatmul.mubr.f32.gmra.mrb[26].mxu1 %v4275_v51  ;;  %v2982_v58 = vsub.f32 %v10342_v26, %v11433_v16  ;;  %v4304_v14 = vsub.f32 %v10346_v59, %v11434_v31  ;;  %v4295_v32 = vand.u32 4294901760, %v4294_v47  ;;  %v11436_v51 = vld [vmem:[#allocation42_spill] sm:$0xff]  ;;  %v11442_v31 = vld [vmem:[#allocation47_spill] sm:$0xff] }
 0x1a9   :  { %7952 = vmatpush3.bf16.msra.mxu0 %v11432_v42  ;;  %8144 = vmatpush3.bf16.msra.mxu1 %v11432_v42  ;;  %v4314_v12 = vsub.f32 %v10364_v27, %v11435_v19  ;;  %v2993_v4 = vand.u32 4294901760, %v2992_v50  ;;  %v11444_v50 = vld [vmem:[#allocation49_spill] sm:$0xff]  ;;  %v11445_v19 = vld [vmem:[#allocation50_spill] sm:$0xff] }
 0x1aa   :  { %6891 = vmatprep.mubr.f32.mxu0 %v2963_v21  ;;  %7227 = vmatprep.mubr.f32.mxu1 %v4285_v7  ;;  %v2983_v16 = vand.u32 4294901760, %v2982_v58  ;;  %v4305_v42 = vand.u32 4294901760, %v4304_v14  ;;  %v11437_v21 = vld [vmem:[#allocation43_spill] sm:$0xff]  ;;  %v11440_v7 = vld [vmem:[#allocation45_spill] sm:$0xff]  ;;  %v11441_v58 = vld [vmem:[#allocation46_spill] sm:$0xff] }
 0x1ab   :  { %7954 = vmatprep.subr.bf16.mxu0 %v11436_v51  ;;  %8146 = vmatprep.subr.bf16.mxu1 %v11436_v51  ;;  %v4315_v47 = vand.u32 4294901760, %v4314_v12  ;;  %v11443_v14 = vld [vmem:[#allocation48_spill] sm:$0xff] }
 0x1ac   :  { %6892 = vmatmul.mubr.f32.gmra.mrb[28].mxu0 %v2973_v9  ;;  %7228 = vmatmul.mubr.f32.gmra.mrb[28].mxu1 %v4295_v32  ;;  %v11438_v9 = vld [vmem:[#allocation41_spill] sm:$0xff]  ;;  %v11439_v32 = vld [vmem:[#allocation44_spill] sm:$0xff] }
 0x1ad   :  { %7956 = vmatpush3.bf16.msra.mxu0 %v11436_v51  ;;  %8148 = vmatpush3.bf16.msra.mxu1 %v11436_v51  ;;  %v11446_v12 = vld [vmem:[#allocation60_spill] sm:$0xff]  ;;  %v11447_v51 = vld [vmem:[#allocation61_spill] sm:$0xff] }
 0x1ae   :  { %6894 = vmatprep.mubr.f32.mxu0 %v2983_v16  ;;  %7230 = vmatprep.mubr.f32.mxu1 %v4305_v42  ;;  %v11448_v16 = vld [vmem:[#allocation62_spill] sm:$0xff]  ;;  %v11449_v42 = vld [vmem:[#allocation12_spill] sm:$0xff] }
 0x1af   :  { %7958 = vmatprep.subr.bf16.mxu0 %v11437_v21  ;;  %8150 = vmatprep.subr.bf16.mxu1 %v11437_v21 }
 0x1b0   :  { %6895 = vmatmul.mubr.f32.gmra.mrb[30].mxu0 %v2993_v4  ;;  %7231 = vmatmul.mubr.f32.gmra.mrb[30].mxu1 %v4315_v47  ;;  %v11450_v4 = vld [vmem:[#allocation63_spill] sm:$0xff]  ;;  %v11451_v47 = vld [vmem:[#allocation64_spill] sm:$0xff] }
 0x1b1   :  { %7960 = vmatpush3.bf16.msra.mxu0 %v11437_v21  ;;  %8152 = vmatpush3.bf16.msra.mxu1 %v11437_v21  ;;  %v11452_v21 = vld [vmem:[#allocation65_spill] sm:$0xff] }
 0x1b2   :  { %6929 = vmatprep.mubr.f32.mxu0 %v9962_v53  ;;  %7265 = vmatprep.mubr.f32.mxu1 %v9969_v44 }
 0x1b3   :  { %7962 = vmatprep.subr.bf16.mxu0 %v11438_v9  ;;  %8154 = vmatprep.subr.bf16.mxu1 %v11438_v9 }
 0x1b4   :  { %6930 = vmatmul.mubr.f32.vlgmr.msra.gmra.mrb[16].mxu0 %v9972_v63  ;;  %7266 = vmatmul.mubr.f32.vlgmr.msra.gmra.mrb[16].mxu1 %v9975_v5 }
 0x1b5   :  { %7964 = vmatpush3.bf16.msra.mxu0 %v11438_v9  ;;  %8156 = vmatpush3.bf16.msra.mxu1 %v11438_v9  ;;  %v11453_v9 = vld [vmem:[#allocation66_spill] sm:$0xff] }
 0x1b6   :  { %6932 = vmatprep.mubr.f32.mxu0 %v9986_v49  ;;  %7268 = vmatprep.mubr.f32.mxu1 %v9989_v60 }
 0x1b7   :  { %7966 = vmatprep.subr.bf16.mxu0 %v11439_v32  ;;  %8158 = vmatprep.subr.bf16.mxu1 %v11439_v32 }
 0x1b8   :  { %6933 = vmatmul.mubr.f32.gmra.mrb[18].mxu0 %v9992_v18  ;;  %7269 = vmatmul.mubr.f32.gmra.mrb[18].mxu1 %v10011_v61 }
 0x1b9   :  { %7968 = vmatpush3.bf16.msra.mxu0 %v11439_v32  ;;  %8160 = vmatpush3.bf16.msra.mxu1 %v11439_v32  ;;  %v11454_v32 = vld [vmem:[#allocation13_spill] sm:$0xff] }
 0x1ba   :  { %6935 = vmatprep.mubr.f32.mxu0 %v10033_v56  ;;  %7271 = vmatprep.mubr.f32.mxu1 %v10047_v40 }
 0x1bb   :  { %7970 = vmatprep.subr.bf16.mxu0 %v11440_v7  ;;  %8162 = vmatprep.subr.bf16.mxu1 %v11440_v7 }
 0x1bc   :  { %6936 = vmatmul.mubr.f32.gmra.mrb[20].mxu0 %v10050_v55  ;;  %7272 = vmatmul.mubr.f32.gmra.mrb[20].mxu1 %v10053_v38 }
 0x1bd   :  { %7972 = vmatpush3.bf16.msra.mxu0 %v11440_v7  ;;  %8164 = vmatpush3.bf16.msra.mxu1 %v11440_v7  ;;  %v11455_v7 = vld [vmem:[#allocation73_spill] sm:$0xff] }
 0x1be   :  { %6938 = vmatprep.mubr.f32.mxu0 %v10072_v35  ;;  %7274 = vmatprep.mubr.f32.mxu1 %v10075_v23 }
 0x1bf   :  { %7974 = vmatprep.subr.bf16.mxu0 %v11441_v58  ;;  %8166 = vmatprep.subr.bf16.mxu1 %v11441_v58 }
 0x1c0   :  { %6939 = vmatmul.mubr.f32.gmra.mrb[22].mxu0 %v10078_v48  ;;  %7275 = vmatmul.mubr.f32.gmra.mrb[22].mxu1 %v10111_v46 }
 0x1c1   :  { %7976 = vmatpush3.bf16.msra.mxu0 %v11441_v58  ;;  %8168 = vmatpush3.bf16.msra.mxu1 %v11441_v58  ;;  %v11456_v58 = vld [vmem:[#allocation74_spill] sm:$0xff] }
 0x1c2   :  { %6941 = vmatprep.mubr.f32.mxu0 %v10167_v17  ;;  %7277 = vmatprep.mubr.f32.mxu1 %v10170_v13 }
 0x1c3   :  { %7978 = vmatprep.subr.bf16.mxu0 %v11442_v31  ;;  %8170 = vmatprep.subr.bf16.mxu1 %v11442_v31 }
 0x1c4   :  { %6942 = vmatmul.mubr.f32.gmra.mrb[24].mxu0 %v10184_v28  ;;  %7278 = vmatmul.mubr.f32.gmra.mrb[24].mxu1 %v10187_v1 }
 0x1c5   :  { %7980 = vmatpush3.bf16.msra.mxu0 %v11442_v31  ;;  %8172 = vmatpush3.bf16.msra.mxu1 %v11442_v31  ;;  %v11457_v31 = vld [vmem:[#allocation75_spill] sm:$0xff] }
 0x1c6   :  { %6944 = vmatprep.mubr.f32.mxu0 %v10210_v43  ;;  %7280 = vmatprep.mubr.f32.mxu1 %v10213_v45  ;;  %v11474_v45 = vand.u32 4294901760, %v11446_v12 }
 0x1c7   :  { %7982 = vmatprep.subr.bf16.mxu0 %v11443_v14  ;;  %8174 = vmatprep.subr.bf16.mxu1 %v11443_v14 }
 0x1c8   :  { %6945 = vmatmul.mubr.f32.gmra.mrb[26].mxu0 %v10237_v52  ;;  %7281 = vmatmul.mubr.f32.gmra.mrb[26].mxu1 %v10240_v10  ;;  %v11470_v10 = vand.u32 4294901760, %v9983_v37  ;;  %v11472_v52 = vld [vmem:[#allocation11_spill] sm:$0xff] }
 0x1c9   :  { %7984 = vmatpush3.bf16.msra.mxu0 %v11443_v14  ;;  %8176 = vmatpush3.bf16.msra.mxu1 %v11443_v14  ;;  %v11458_v14 = vld [vmem:[#allocation77_spill] sm:$0xff] }
 0x1ca   :  { %6947 = vmatprep.mubr.f32.mxu0 %v10258_v30  ;;  %7283 = vmatprep.mubr.f32.mxu1 %v10261_v0  ;;  %v11468_v0 = vld [vmem:[#allocation19_spill] sm:$0xff]  ;;  %v11469_v30 = vld [vmem:[#allocation22_spill] sm:$0xff] }
 0x1cb   :  { %7986 = vmatprep.subr.bf16.mxu0 %v11444_v50  ;;  %8178 = vmatprep.subr.bf16.mxu1 %v11444_v50 }
 0x1cc   :  { %6948 = vmatmul.mubr.f32.gmra.mrb[28].mxu0 %v10277_v11  ;;  %7284 = vmatmul.mubr.f32.gmra.mrb[28].mxu1 %v10280_v15  ;;  %v11466_v15 = vld [vmem:[#allocation95_spill] sm:$0xff]  ;;  %v11467_v11 = vld [vmem:[#allocation16_spill] sm:$0xff] }
 0x1cd   :  { %7988 = vmatpush3.bf16.msra.mxu0 %v11444_v50  ;;  %8180 = vmatpush3.bf16.msra.mxu1 %v11444_v50  ;;  %v11459_v50 = vld [vmem:[#allocation14_spill] sm:$0xff] }
 0x1ce   :  { %6950 = vmatprep.mubr.f32.mxu0 %v10301_v20  ;;  %7286 = vmatprep.mubr.f32.mxu1 %v10304_v54  ;;  %v11464_v54 = vld [vmem:[#allocation15_spill] sm:$0xff]  ;;  %v11465_v20 = vld [vmem:[#allocation94_spill] sm:$0xff] }
 0x1cf   :  { %7990 = vmatprep.subr.bf16.mxu0 %v11445_v19  ;;  %8182 = vmatprep.subr.bf16.mxu1 %v11445_v19 }
 0x1d0   :  { %6951 = vmatmul.mubr.f32.gmra.mrb[30].mxu0 %v10325_v8  ;;  %7287 = vmatmul.mubr.f32.gmra.mrb[30].mxu1 %v10328_v29  ;;  %v11462_v29 = vld [vmem:[#allocation81_spill] sm:$0xff]  ;;  %v11463_v8 = vld [vmem:[#allocation82_spill] sm:$0xff] }
 0x1d1   :  { %7992 = vmatpush3.bf16.msra.mxu0 %v11445_v19  ;;  %8184 = vmatpush3.bf16.msra.mxu1 %v11445_v19  ;;  %v11460_v19 = vld [vmem:[#allocation78_spill] sm:$0xff] }
 0x1d2   :  { %6985 = vmatprep.mubr.f32.mxu0 %v9983_v37  ;;  %7321 = vmatprep.mubr.f32.mxu1 %v10000_v3  ;;  %v11475_v37 = vand.u32 4294901760, %v11447_v51 }
 0x1d3   :  { %7994 = vmatprep.subr.bf16.mxu0 %v11218_v36  ;;  %8186 = vmatprep.subr.bf16.mxu1 %v11218_v36 }
 0x1d4   :  { %6986 = vmatmul.mubr.f32.vlgmr.msra.gmra.mrb[16].mxu0 %v10004_v34  ;;  %7322 = vmatmul.mubr.f32.vlgmr.msra.gmra.mrb[16].mxu1 %v11446_v12  ;;  %v11483_v12 = vand.u32 4294901760, %v11455_v7 }
 0x1d5   :  { %7996 = vmatpush3.bf16.msra.mxu0 %v11218_v36  ;;  %8188 = vmatpush3.bf16.msra.mxu1 %v11218_v36 }
 0x1d6   :  { %6988 = vmatprep.mubr.f32.mxu0 %v11447_v51  ;;  %7324 = vmatprep.mubr.f32.mxu1 %v11448_v16  ;;  %v11484_v51 = vand.u32 4294901760, %v11456_v58 }
 0x1d7   :  { %7998 = vmatprep.subr.bf16.mxu0 %v11449_v42  ;;  %8190 = vmatprep.subr.bf16.mxu1 %v11449_v42 }
 0x1d8   :  { %6989 = vmatmul.mubr.f32.gmra.mrb[18].mxu0 %v11450_v4  ;;  %7325 = vmatmul.mubr.f32.gmra.mrb[18].mxu1 %v11451_v47 }
 0x1d9   :  { %8000 = vmatpush3.bf16.msra.mxu0 %v11449_v42  ;;  %8192 = vmatpush3.bf16.msra.mxu1 %v11449_v42 }
 0x1da   :  { %6991 = vmatprep.mubr.f32.mxu0 %v11452_v21  ;;  %7327 = vmatprep.mubr.f32.mxu1 %v11453_v9 }
 0x1db   :  { %8002 = vmatprep.subr.bf16.mxu0 %v11454_v32  ;;  %8194 = vmatprep.subr.bf16.mxu1 %v11454_v32 }
 0x1dc   :  { %6992 = vmatmul.mubr.f32.gmra.mrb[20].mxu0 %v11455_v7  ;;  %7328 = vmatmul.mubr.f32.gmra.mrb[20].mxu1 %v11456_v58  ;;  %v11490_v7 = vand.u32 4294901760, %v11462_v29  ;;  %v11491_v58 = vand.u32 4294901760, %v11463_v8 }
 0x1dd   :  { %8004 = vmatpush3.bf16.msra.mxu0 %v11454_v32  ;;  %8196 = vmatpush3.bf16.msra.mxu1 %v11454_v32 }
 0x1de   :  { %6994 = vmatprep.mubr.f32.mxu0 %v11457_v31  ;;  %7330 = vmatprep.mubr.f32.mxu1 %v11458_v14 }
 0x1df   :  { %8006 = vmatprep.subr.bf16.mxu0 %v11459_v50  ;;  %8198 = vmatprep.subr.bf16.mxu1 %v11459_v50 }
 0x1e0   :  { %6995 = vmatmul.mubr.f32.gmra.mrb[22].mxu0 %v11460_v19  ;;  %7331 = vmatmul.mubr.f32.gmra.mrb[22].mxu1 %v11461_v25 }
 0x1e1   :  { %8008 = vmatpush3.bf16.msra.mxu0 %v11459_v50  ;;  %8200 = vmatpush3.bf16.msra.mxu1 %v11459_v50 }
 0x1e2   :  { %6997 = vmatprep.mubr.f32.mxu0 %v11462_v29  ;;  %7333 = vmatprep.mubr.f32.mxu1 %v11463_v8  ;;  %v11495_v29 = vand.u32 4294901760, %v10251_v57  ;;  %v11496_v8 = vand.u32 4294901760, %v10255_v24 }
 0x1e3   :  { %8010 = vmatprep.subr.bf16.mxu0 %v11464_v54  ;;  %8202 = vmatprep.subr.bf16.mxu1 %v11464_v54 }
 0x1e4   :  { %6998 = vmatmul.mubr.f32.gmra.mrb[24].mxu0 %v11465_v20  ;;  %7334 = vmatmul.mubr.f32.gmra.mrb[24].mxu1 %v11466_v15 }
 0x1e5   :  { %8012 = vmatpush3.bf16.msra.mxu0 %v11464_v54  ;;  %8204 = vmatpush3.bf16.msra.mxu1 %v11464_v54 }
 0x1e6   :  { %7000 = vmatprep.mubr.f32.mxu0 %v10251_v57  ;;  %7336 = vmatprep.mubr.f32.mxu1 %v10255_v24  ;;  %v11500_v57 = vand.u32 4294901760, %v10294_v62  ;;  %v11501_v24 = vand.u32 4294901760, %v10298_v2 }
 0x1e7   :  { %8014 = vmatprep.subr.bf16.mxu0 %v11467_v11  ;;  %8206 = vmatprep.subr.bf16.mxu1 %v11467_v11 }
 0x1e8   :  { %7001 = vmatmul.mubr.f32.gmra.mrb[26].mxu0 %v10269_v33  ;;  %7337 = vmatmul.mubr.f32.gmra.mrb[26].mxu1 %v10273_v6 }
 0x1e9   :  { %8016 = vmatpush3.bf16.msra.mxu0 %v11467_v11  ;;  %8208 = vmatpush3.bf16.msra.mxu1 %v11467_v11  ;;  %v11473_v11 = vand.u32 4294901760, %v10004_v34  ;;  %v11478_v34 = vand.u32 4294901760, %v11450_v4  ;;  %v11486_v4 = vand.u32 4294901760, %v11458_v14  ;;  %v11493_v14 = vand.u32 4294901760, %v11465_v20 }
 0x1ea   :  { %7003 = vmatprep.mubr.f32.mxu0 %v10294_v62  ;;  %7339 = vmatprep.mubr.f32.mxu1 %v10298_v2  ;;  %v11498_v20 = vand.u32 4294901760, %v10269_v33  ;;  %v11503_v33 = vand.u32 4294901760, %v10318_v39  ;;  %v11505_v62 = vand.u32 4294901760, %v10342_v26  ;;  %v11506_v2 = vand.u32 4294901760, %v10346_v59 }
 0x1eb   :  { %8018 = vmatprep.subr.bf16.mxu0 %v11468_v0  ;;  %8210 = vmatprep.subr.bf16.mxu1 %v11468_v0 }
 0x1ec   :  { %7004 = vmatmul.mubr.f32.gmra.mrb[28].mxu0 %v10318_v39  ;;  %7340 = vmatmul.mubr.f32.gmra.mrb[28].mxu1 %v10322_v41  ;;  %v11508_v39 = vand.u32 4294901760, %v10360_v22 }
 0x1ed   :  { %8020 = vmatpush3.bf16.msra.mxu0 %v11468_v0  ;;  %8212 = vmatpush3.bf16.msra.mxu1 %v11468_v0  ;;  %v11471_v0 = vand.u32 4294901760, %v10000_v3  ;;  %v11477_v3 = vld [vmem:[#allocation53_spill] sm:$0xff] }
 0x1ee   :  { %7006 = vmatprep.mubr.f32.mxu0 %v10342_v26  ;;  %7342 = vmatprep.mubr.f32.mxu1 %v10346_v59  ;;  %v11511_v26 = vld [vmem:[#allocation16_spill] sm:$0xff]  ;;  %v11513_v59 = vld [vmem:[#allocation98_spill] sm:$0xff] }
 0x1ef   :  { %8022 = vmatprep.subr.bf16.mxu0 %v11469_v30  ;;  %8214 = vmatprep.subr.bf16.mxu1 %v11469_v30 }
 0x1f0   :  { %7007 = vmatmul.mubr.f32.gmra.mrb[30].mxu0 %v10360_v22  ;;  %7343 = vmatmul.mubr.f32.gmra.mrb[30].mxu1 %v10364_v27  ;;  %v11512_v22 = vld [vmem:[#allocation97_spill] sm:$0xff] }
 0x1f1   :  { %8024 = vmatpush3.bf16.msra.mxu0 %v11469_v30  ;;  %8216 = vmatpush3.bf16.msra.mxu1 %v11469_v30 }
 0x1f2   :  { %7041 = vmatprep.mubr.f32.mxu0 %v11470_v10  ;;  %7377 = vmatprep.mubr.f32.mxu1 %v11471_v0  ;;  %v11476_v10 = vand.u32 4294901760, %v11448_v16  ;;  %v11479_v0 = vand.u32 4294901760, %v11451_v47  ;;  %v11485_v16 = vand.u32 4294901760, %v11457_v31  ;;  %v11487_v47 = vld [vmem:[#allocation55_spill] sm:$0xff]  ;;  %v11492_v31 = vld [vmem:[#allocation56_spill] sm:$0xff] }
 0x1f3   :  { %8026 = vmatprep.subr.bf16.mxu0 %v11472_v52  ;;  %8218 = vmatprep.subr.bf16.mxu1 %v11472_v52 }
 0x1f4   :  { %7042 = vmatmul.mubr.f32.vlgmr.msra.gmra.mrb[16].mxu0 %v11473_v11  ;;  %7378 = vmatmul.mubr.f32.vlgmr.msra.gmra.mrb[16].mxu1 %v11474_v45  ;;  %v11480_v45 = vand.u32 4294901760, %v11452_v21  ;;  %v11482_v11 = vld [vmem:[#allocation54_spill] sm:$0xff]  ;;  %v11488_v21 = vand.u32 4294901760, %v11460_v19  ;;  %v11497_v19 = vld [vmem:[#allocation57_spill] sm:$0xff] }
 0x1f5   :  { %8028 = vmatpush3.bf16.msra.mxu0 %v11472_v52  ;;  %8220 = vmatpush3.bf16.msra.mxu1 %v11472_v52  ;;  %v11481_v52 = vand.u32 4294901760, %v11453_v9  ;;  %v11489_v9 = vand.u32 4294901760, %v11461_v25  ;;  %v11494_v25 = vand.u32 4294901760, %v11466_v15  ;;  %v11499_v15 = vand.u32 4294901760, %v10273_v6 }
 0x1f6   :  { %7044 = vmatprep.mubr.f32.mxu0 %v11475_v37  ;;  %7380 = vmatprep.mubr.f32.mxu1 %v11476_v10  ;;  %v11502_v37 = vld [vmem:[#allocation58_spill] sm:$0xff]  ;;  %v11504_v6 = vand.u32 4294901760, %v10322_v41  ;;  %v11507_v10 = vld [vmem:[#allocation59_spill] sm:$0xff]  ;;  %v11509_v41 = vand.u32 4294901760, %v10364_v27  ;;  %v11514_v27 = vld [vmem:[#allocation17_spill] sm:$0xff] }
 0x1f7   :  { %8030 = vmatprep.subr.bf16.mxu0 %v11477_v3  ;;  %8222 = vmatprep.subr.bf16.mxu1 %v11477_v3 }
 0x1f8   :  { %7045 = vmatmul.mubr.f32.gmra.mrb[18].mxu0 %v11478_v34  ;;  %7381 = vmatmul.mubr.f32.gmra.mrb[18].mxu1 %v11479_v0  ;;  %v11520_v34 = vld [vmem:[#allocation26_spill] sm:$0xff]  ;;  %v11521_v0 = vld [vmem:[#allocation27_spill] sm:$0xff] }
 0x1f9   :  { %8032 = vmatpush3.bf16.msra.mxu0 %v11477_v3  ;;  %8224 = vmatpush3.bf16.msra.mxu1 %v11477_v3  ;;  %v11519_v3 = vld [vmem:[#allocation25_spill] sm:$0xff] }
 0x1fa   :  { %7047 = vmatprep.mubr.f32.mxu0 %v11480_v45  ;;  %7383 = vmatprep.mubr.f32.mxu1 %v11481_v52  ;;  %v11522_v45 = vld [vmem:[#allocation28_spill] sm:$0xff] }
 0x1fb   :  { %8034 = vmatprep.subr.bf16.mxu0 %v11482_v11  ;;  %8226 = vmatprep.subr.bf16.mxu1 %v11482_v11 }
 0x1fc   :  { %7048 = vmatmul.mubr.f32.gmra.mrb[20].mxu0 %v11483_v12  ;;  %7384 = vmatmul.mubr.f32.gmra.mrb[20].mxu1 %v11484_v51 }
 0x1fd   :  { %8036 = vmatpush3.bf16.msra.mxu0 %v11482_v11  ;;  %8228 = vmatpush3.bf16.msra.mxu1 %v11482_v11 }
 0x1fe   :  { %7050 = vmatprep.mubr.f32.mxu0 %v11485_v16  ;;  %7386 = vmatprep.mubr.f32.mxu1 %v11486_v4 }
 0x1ff   :  { %8038 = vmatprep.subr.bf16.mxu0 %v11487_v47  ;;  %8230 = vmatprep.subr.bf16.mxu1 %v11487_v47 }
 0x200   :  { %7051 = vmatmul.mubr.f32.gmra.mrb[22].mxu0 %v11488_v21  ;;  %7387 = vmatmul.mubr.f32.gmra.mrb[22].mxu1 %v11489_v9 }
 0x201   :  { %8040 = vmatpush3.bf16.msra.mxu0 %v11487_v47  ;;  %8232 = vmatpush3.bf16.msra.mxu1 %v11487_v47 }
 0x202   :  { %7053 = vmatprep.mubr.f32.mxu0 %v11490_v7  ;;  %7389 = vmatprep.mubr.f32.mxu1 %v11491_v58 }
 0x203   :  { %8042 = vmatprep.subr.bf16.mxu0 %v11492_v31  ;;  %8234 = vmatprep.subr.bf16.mxu1 %v11492_v31 }
 0x204   :  { %7054 = vmatmul.mubr.f32.gmra.mrb[24].mxu0 %v11493_v14  ;;  %7390 = vmatmul.mubr.f32.gmra.mrb[24].mxu1 %v11494_v25 }
 0x205   :  { %8044 = vmatpush3.bf16.msra.mxu0 %v11492_v31  ;;  %8236 = vmatpush3.bf16.msra.mxu1 %v11492_v31 }
 0x206   :  { %7056 = vmatprep.mubr.f32.mxu0 %v11495_v29  ;;  %7392 = vmatprep.mubr.f32.mxu1 %v11496_v8 }
 0x207   :  { %8046 = vmatprep.subr.bf16.mxu0 %v11497_v19  ;;  %8238 = vmatprep.subr.bf16.mxu1 %v11497_v19 }
 0x208   :  { %7057 = vmatmul.mubr.f32.gmra.mrb[26].mxu0 %v11498_v20  ;;  %7393 = vmatmul.mubr.f32.gmra.mrb[26].mxu1 %v11499_v15 }
 0x209   :  { %8048 = vmatpush3.bf16.msra.mxu0 %v11497_v19  ;;  %8240 = vmatpush3.bf16.msra.mxu1 %v11497_v19 }
 0x20a   :  { %7059 = vmatprep.mubr.f32.mxu0 %v11500_v57  ;;  %7395 = vmatprep.mubr.f32.mxu1 %v11501_v24 }
 0x20b   :  { %8050 = vmatprep.subr.bf16.mxu0 %v11502_v37  ;;  %8242 = vmatprep.subr.bf16.mxu1 %v11502_v37 }
 0x20c   :  { %7060 = vmatmul.mubr.f32.gmra.mrb[28].mxu0 %v11503_v33  ;;  %7396 = vmatmul.mubr.f32.gmra.mrb[28].mxu1 %v11504_v6 }
 0x20d   :  { %8052 = vmatpush3.bf16.msra.mxu0 %v11502_v37  ;;  %8244 = vmatpush3.bf16.msra.mxu1 %v11502_v37 }
 0x20e   :  { %7062 = vmatprep.mubr.f32.mxu0 %v11505_v62  ;;  %7398 = vmatprep.mubr.f32.mxu1 %v11506_v2 }
 0x20f   :  { %8054 = vmatprep.subr.bf16.mxu0 %v11507_v10  ;;  %8246 = vmatprep.subr.bf16.mxu1 %v11507_v10 }
 0x210   :  { %7063 = vmatmul.mubr.f32.gmra.mrb[30].mxu0 %v11508_v39  ;;  %7399 = vmatmul.mubr.f32.gmra.mrb[30].mxu1 %v11509_v41 }
 0x211   :  { %8056 = vmatpush3.bf16.msra.mxu0 %v11507_v10  ;;  %8248 = vmatpush3.bf16.msra.mxu1 %v11507_v10 }
 0x212   :  { %7097 = vmatprep.mubr.f32.mxu0 %v9962_v53  ;;  %7433 = vmatprep.mubr.f32.mxu1 %v9969_v44 }
 0x213   :  { %8058 = vmatprep.subr.bf16.mxu0 %v11218_v36  ;;  %8250 = vmatprep.subr.bf16.mxu1 %v11218_v36 }
 0x214   :  { %7098 = vmatmul.mubr.f32.vlgmr.msra.gmra.mrb[16].mxu0 %v9972_v63  ;;  %7434 = vmatmul.mubr.f32.vlgmr.msra.gmra.mrb[16].mxu1 %v9975_v5 }
 0x215   :  { %8060 = vmatpush3.bf16.msra.mxu0 %v11218_v36  ;;  %8252 = vmatpush3.bf16.msra.mxu1 %v11218_v36  ;;  %v11510_v36 = vld [vmem:[#allocation93_spill] sm:$0xff] }
 0x216   :  { %7100 = vmatprep.mubr.f32.mxu0 %v9986_v49  ;;  %7436 = vmatprep.mubr.f32.mxu1 %v9989_v60 }
 0x217   :  { %8062 = vmatprep.subr.bf16.mxu0 %v11449_v42  ;;  %8254 = vmatprep.subr.bf16.mxu1 %v11449_v42 }
 0x218   :  { %7101 = vmatmul.mubr.f32.gmra.mrb[18].mxu0 %v9992_v18  ;;  %7437 = vmatmul.mubr.f32.gmra.mrb[18].mxu1 %v10011_v61 }
 0x219   :  { %8064 = vmatpush3.bf16.msra.mxu0 %v11449_v42  ;;  %8256 = vmatpush3.bf16.msra.mxu1 %v11449_v42  ;;  %v11515_v42 = vld [vmem:[#allocation18_spill] sm:$0xff] }
 0x21a   :  { %7103 = vmatprep.mubr.f32.mxu0 %v10033_v56  ;;  %7439 = vmatprep.mubr.f32.mxu1 %v10047_v40 }
 0x21b   :  { %8066 = vmatprep.subr.bf16.mxu0 %v11454_v32  ;;  %8258 = vmatprep.subr.bf16.mxu1 %v11454_v32 }
 0x21c   :  { %7104 = vmatmul.mubr.f32.gmra.mrb[20].mxu0 %v10050_v55  ;;  %7440 = vmatmul.mubr.f32.gmra.mrb[20].mxu1 %v10053_v38 }
 0x21d   :  { %8068 = vmatpush3.bf16.msra.mxu0 %v11454_v32  ;;  %8260 = vmatpush3.bf16.msra.mxu1 %v11454_v32  ;;  %v11517_v32 = vld [vmem:[#allocation20_spill] sm:$0xff] }
 0x21e   :  { %7106 = vmatprep.mubr.f32.mxu0 %v10072_v35  ;;  %7442 = vmatprep.mubr.f32.mxu1 %v10075_v23 }
 0x21f   :  { %8070 = vmatprep.subr.bf16.mxu0 %v11459_v50  ;;  %8262 = vmatprep.subr.bf16.mxu1 %v11459_v50 }
 0x220   :  { %7107 = vmatmul.mubr.f32.gmra.mrb[22].mxu0 %v10078_v48  ;;  %7443 = vmatmul.mubr.f32.gmra.mrb[22].mxu1 %v10111_v46 }
 0x221   :  { %8072 = vmatpush3.bf16.msra.mxu0 %v11459_v50  ;;  %8264 = vmatpush3.bf16.msra.mxu1 %v11459_v50  ;;  %v11518_v50 = vld [vmem:[#allocation21_spill] sm:$0xff] }
 0x222   :  { %7109 = vmatprep.mubr.f32.mxu0 %v10167_v17  ;;  %7445 = vmatprep.mubr.f32.mxu1 %v10170_v13 }
 0x223   :  { %8074 = vmatprep.subr.bf16.mxu0 %v11464_v54  ;;  %8266 = vmatprep.subr.bf16.mxu1 %v11464_v54 }
 0x224   :  { %7110 = vmatmul.mubr.f32.gmra.mrb[24].mxu0 %v10184_v28  ;;  %7446 = vmatmul.mubr.f32.gmra.mrb[24].mxu1 %v10187_v1 }
 0x225   :  { %8076 = vmatpush3.bf16.msra.mxu0 %v11464_v54  ;;  %8268 = vmatpush3.bf16.msra.mxu1 %v11464_v54  ;;  %v11516_v54 = vld [vmem:[#allocation19_spill] sm:$0xff] }
 0x226   :  { %7112 = vmatprep.mubr.f32.mxu0 %v10210_v43  ;;  %7448 = vmatprep.mubr.f32.mxu1 %v11510_v36 }
 0x227   :  { %8078 = vmatprep.subr.bf16.mxu0 %v11511_v26  ;;  %8270 = vmatprep.subr.bf16.mxu1 %v11511_v26 }
 0x228   :  { %7113 = vmatmul.mubr.f32.gmra.mrb[26].mxu0 %v11512_v22  ;;  %7449 = vmatmul.mubr.f32.gmra.mrb[26].mxu1 %v11513_v59 }
 0x229   :  { %8080 = vmatpush3.bf16.msra.mxu0 %v11511_v26  ;;  %8272 = vmatpush3.bf16.msra.mxu1 %v11511_v26 }
 0x22a   :  { %7115 = vmatprep.mubr.f32.mxu0 %v11514_v27  ;;  %7451 = vmatprep.mubr.f32.mxu1 %v11515_v42 }
 0x22b   :  { %8082 = vmatprep.subr.bf16.mxu0 %v11516_v54  ;;  %8274 = vmatprep.subr.bf16.mxu1 %v11516_v54 }
 0x22c   :  { %7116 = vmatmul.mubr.f32.gmra.mrb[28].mxu0 %v11517_v32  ;;  %7452 = vmatmul.mubr.f32.gmra.mrb[28].mxu1 %v11518_v50 }
 0x22d   :  { %8084 = vmatpush3.bf16.msra.mxu0 %v11516_v54  ;;  %8276 = vmatpush3.bf16.msra.mxu1 %v11516_v54 }
 0x22e   :  { %7118 = vmatprep.mubr.f32.mxu0 %v11519_v3  ;;  %7454 = vmatprep.mubr.f32.mxu1 %v11520_v34 }
 0x22f   :  { %8086 = vmatprep.subr.bf16.mxu0 %v11469_v30  ;;  %8278 = vmatprep.subr.bf16.mxu1 %v11469_v30 }
 0x230   :  { %7119 = vmatmul.mubr.f32.gmra.mrb[30].mxu0 %v11521_v0  ;;  %7455 = vmatmul.mubr.f32.gmra.mrb[30].mxu1 %v11522_v45 }
 0x231   :  { %8088 = vmatpush3.bf16.msra.mxu0 %v11469_v30  ;;  %8280 = vmatpush3.bf16.msra.mxu1 %v11469_v30 }
 0x232   :  { %7153 = vmatprep.mubr.f32.mxu0 %v9962_v53  ;;  %7489 = vmatprep.mubr.f32.mxu1 %v9969_v44 }
 0x234   :  { %7154 = vmatmul.mubr.f32.vlgmr.msra.gmra.mrb[16].mxu0 %v9972_v63  ;;  %7490 = vmatmul.mubr.f32.vlgmr.msra.gmra.mrb[16].mxu1 %v9975_v5 }
 0x235   :  { %7156 = vmatprep.mubr.f32.mxu0 %v9986_v49  ;;  %7492 = vmatprep.mubr.f32.mxu1 %v9989_v60 }
 0x238   :  { %7157 = vmatmul.mubr.f32.gmra.mrb[18].mxu0 %v9992_v18  ;;  %7493 = vmatmul.mubr.f32.gmra.mrb[18].mxu1 %v10011_v61 }
 0x239   :  { %7159 = vmatprep.mubr.f32.mxu0 %v10033_v56  ;;  %7495 = vmatprep.mubr.f32.mxu1 %v10047_v40 }
 0x23c   :  { %7160 = vmatmul.mubr.f32.gmra.mrb[20].mxu0 %v10050_v55  ;;  %7496 = vmatmul.mubr.f32.gmra.mrb[20].mxu1 %v10053_v38 }
 0x23d   :  { %7162 = vmatprep.mubr.f32.mxu0 %v10072_v35  ;;  %7498 = vmatprep.mubr.f32.mxu1 %v10075_v23 }
 0x240   :  { %7163 = vmatmul.mubr.f32.gmra.mrb[22].mxu0 %v10078_v48  ;;  %7499 = vmatmul.mubr.f32.gmra.mrb[22].mxu1 %v10111_v46 }
 0x241   :  { %7165 = vmatprep.mubr.f32.mxu0 %v10167_v17  ;;  %7501 = vmatprep.mubr.f32.mxu1 %v10170_v13 }
 0x244   :  { %7166 = vmatmul.mubr.f32.gmra.mrb[24].mxu0 %v10184_v28  ;;  %7502 = vmatmul.mubr.f32.gmra.mrb[24].mxu1 %v10187_v1 }
 0x245   :  { %7168 = vmatprep.mubr.f32.mxu0 %v10210_v43  ;;  %7504 = vmatprep.mubr.f32.mxu1 %v11510_v36 }
 0x247   :  { %v6483_v53 = vpop.f32.mrb[0].mxu0  ;;  %v6819_v44 = vpop.f32.mrb[0].mxu1 }
 0x248   :  { %1401 = vst [vmem:[#allocation7 + $0x8] sm:$0xff] %v6483_v53  ;;  %2723 = vst [vmem:[#allocation7 + $0x88] sm:$0xff] %v6819_v44  ;;  %v1306_v63 = vpop.f32.mrb[1].mxu0  ;;  %v2628_v5 = vpop.f32.mrb[1].mxu1  ;;  %7169 = vmatmul.mubr.f32.gmra.mrb[26].mxu0 %v11512_v22  ;;  %7505 = vmatmul.mubr.f32.gmra.mrb[26].mxu1 %v11513_v59 }
 0x249   :  { %1400 = vst [vmem:[#allocation7] sm:$0xff] %v1306_v63  ;;  %2722 = vst [vmem:[#allocation7 + $0x80] sm:$0xff] %v2628_v5  ;;  %7171 = vmatprep.mubr.f32.mxu0 %v11514_v27  ;;  %7507 = vmatprep.mubr.f32.mxu1 %v11515_v42 }
 0x24b   :  { %v6486_v1 = vpop.f32.mrb[2].mxu0  ;;  %v6822_v28 = vpop.f32.mrb[2].mxu1 }
 0x24c   :  { %1403 = vst [vmem:[#allocation7 + $0x18] sm:$0xff] %v6486_v1  ;;  %2725 = vst [vmem:[#allocation7 + $0x98] sm:$0xff] %v6822_v28  ;;  %v1318_v49 = vpop.f32.mrb[3].mxu0  ;;  %v2640_v60 = vpop.f32.mrb[3].mxu1  ;;  %7172 = vmatmul.mubr.f32.gmra.mrb[28].mxu0 %v11517_v32  ;;  %7508 = vmatmul.mubr.f32.gmra.mrb[28].mxu1 %v11518_v50 }
 0x24d   :  { %1402 = vst [vmem:[#allocation7 + $0x10] sm:$0xff] %v1318_v49  ;;  %2724 = vst [vmem:[#allocation7 + $0x90] sm:$0xff] %v2640_v60  ;;  %7174 = vmatprep.mubr.f32.mxu0 %v11519_v3  ;;  %7510 = vmatprep.mubr.f32.mxu1 %v11520_v34 }
 0x24f   :  { %v6489_v18 = vpop.f32.mrb[4].mxu0  ;;  %v6825_v61 = vpop.f32.mrb[4].mxu1 }
 0x250   :  { %1405 = vst [vmem:[#allocation7 + $0x28] sm:$0xff] %v6489_v18  ;;  %2727 = vst [vmem:[#allocation7 + $0xa8] sm:$0xff] %v6825_v61  ;;  %v1330_v48 = vpop.f32.mrb[5].mxu0  ;;  %v2652_v56 = vpop.f32.mrb[5].mxu1  ;;  %7175 = vmatmul.mubr.f32.gmra.mrb[30].mxu0 %v11521_v0  ;;  %7511 = vmatmul.mubr.f32.gmra.mrb[30].mxu1 %v11522_v45 }
 0x251   :  { %1404 = vst [vmem:[#allocation7 + $0x20] sm:$0xff] %v1330_v48  ;;  %2726 = vst [vmem:[#allocation7 + $0xa0] sm:$0xff] %v2652_v56 }
 0x253   :  { %v6492_v40 = vpop.f32.mrb[6].mxu0  ;;  %v6828_v55 = vpop.f32.mrb[6].mxu1 }
 0x254   :  { %1407 = vst [vmem:[#allocation7 + $0x38] sm:$0xff] %v6492_v40  ;;  %2729 = vst [vmem:[#allocation7 + $0xb8] sm:$0xff] %v6828_v55  ;;  %v1342_v38 = vpop.f32.mrb[7].mxu0  ;;  %v2664_v46 = vpop.f32.mrb[7].mxu1 }
 0x255   :  { %1406 = vst [vmem:[#allocation7 + $0x30] sm:$0xff] %v1342_v38  ;;  %2728 = vst [vmem:[#allocation7 + $0xb0] sm:$0xff] %v2664_v46 }
 0x257   :  { %v6495_v35 = vpop.f32.mrb[8].mxu0  ;;  %v6831_v23 = vpop.f32.mrb[8].mxu1 }
 0x258   :  { %1409 = vst [vmem:[#allocation7 + $0x48] sm:$0xff] %v6495_v35  ;;  %2731 = vst [vmem:[#allocation7 + $0xc8] sm:$0xff] %v6831_v23  ;;  %v1354_v13 = vpop.f32.mrb[9].mxu0  ;;  %v2676_v17 = vpop.f32.mrb[9].mxu1 }
 0x259   :  { %1408 = vst [vmem:[#allocation7 + $0x40] sm:$0xff] %v1354_v13  ;;  %2730 = vst [vmem:[#allocation7 + $0xc0] sm:$0xff] %v2676_v17 }
 0x25b   :  { %v6498_v43 = vpop.f32.mrb[10].mxu0  ;;  %v6834_v30 = vpop.f32.mrb[10].mxu1 }
 0x25c   :  { %1411 = vst [vmem:[#allocation7 + $0x58] sm:$0xff] %v6498_v43  ;;  %2733 = vst [vmem:[#allocation7 + $0xd8] sm:$0xff] %v6834_v30  ;;  %v1366_v52 = vpop.f32.mrb[11].mxu0  ;;  %v2688_v11 = vpop.f32.mrb[11].mxu1 }
 0x25d   :  { %1410 = vst [vmem:[#allocation7 + $0x50] sm:$0xff] %v1366_v52  ;;  %2732 = vst [vmem:[#allocation7 + $0xd0] sm:$0xff] %v2688_v11 }
 0x25f   :  { %v6501_v12 = vpop.f32.mrb[12].mxu0  ;;  %v6837_v51 = vpop.f32.mrb[12].mxu1 }
 0x260   :  { %1413 = vst [vmem:[#allocation7 + $0x68] sm:$0xff] %v6501_v12  ;;  %2735 = vst [vmem:[#allocation7 + $0xe8] sm:$0xff] %v6837_v51  ;;  %v1378_v16 = vpop.f32.mrb[13].mxu0  ;;  %v2700_v4 = vpop.f32.mrb[13].mxu1 }
 0x261   :  { %1412 = vst [vmem:[#allocation7 + $0x60] sm:$0xff] %v1378_v16  ;;  %2734 = vst [vmem:[#allocation7 + $0xe0] sm:$0xff] %v2700_v4 }
 0x263   :  { %v6504_v47 = vpop.f32.mrb[14].mxu0  ;;  %v6840_v21 = vpop.f32.mrb[14].mxu1 }
 0x264   :  { %1415 = vst [vmem:[#allocation7 + $0x78] sm:$0xff] %v6504_v47  ;;  %2737 = vst [vmem:[#allocation7 + $0xf8] sm:$0xff] %v6840_v21  ;;  %v1390_v9 = vpop.f32.mrb[15].mxu0  ;;  %v2712_v7 = vpop.f32.mrb[15].mxu1 }
 0x265   :  { %1414 = vst [vmem:[#allocation7 + $0x70] sm:$0xff] %v1390_v9  ;;  %2736 = vst [vmem:[#allocation7 + $0xf0] sm:$0xff] %v2712_v7 }
 0x307   :  { %v7155_v58 = vpop.f32.mrb[16].mxu0  ;;  %v7491_v31 = vpop.f32.mrb[16].mxu1 }
 0x308   :  { %4045 = vst [vmem:[#allocation7 + $0x108] sm:$0xff] %v7155_v58  ;;  %5367 = vst [vmem:[#allocation7 + $0x188] sm:$0xff] %v7491_v31  ;;  %v3950_v14 = vpop.f32.mrb[17].mxu0  ;;  %v5272_v25 = vpop.f32.mrb[17].mxu1 }
 0x309   :  { %4044 = vst [vmem:[#allocation7 + $0x100] sm:$0xff] %v3950_v14  ;;  %5366 = vst [vmem:[#allocation7 + $0x180] sm:$0xff] %v5272_v25 }
 0x30b   :  { %v7158_v29 = vpop.f32.mrb[18].mxu0  ;;  %v7494_v8 = vpop.f32.mrb[18].mxu1 }
 0x30c   :  { %4047 = vst [vmem:[#allocation7 + $0x118] sm:$0xff] %v7158_v29  ;;  %5369 = vst [vmem:[#allocation7 + $0x198] sm:$0xff] %v7494_v8  ;;  %v3962_v19 = vpop.f32.mrb[19].mxu0  ;;  %v5284_v20 = vpop.f32.mrb[19].mxu1 }
 0x30d   :  { %4046 = vst [vmem:[#allocation7 + $0x110] sm:$0xff] %v3962_v19  ;;  %5368 = vst [vmem:[#allocation7 + $0x190] sm:$0xff] %v5284_v20 }
 0x30f   :  { %v7161_v15 = vpop.f32.mrb[20].mxu0  ;;  %v7497_v57 = vpop.f32.mrb[20].mxu1 }
 0x310   :  { %4049 = vst [vmem:[#allocation7 + $0x128] sm:$0xff] %v7161_v15  ;;  %5371 = vst [vmem:[#allocation7 + $0x1a8] sm:$0xff] %v7497_v57  ;;  %v3974_v24 = vpop.f32.mrb[21].mxu0  ;;  %v5296_v37 = vpop.f32.mrb[21].mxu1 }
 0x311   :  { %4048 = vst [vmem:[#allocation7 + $0x120] sm:$0xff] %v3974_v24  ;;  %5370 = vst [vmem:[#allocation7 + $0x1a0] sm:$0xff] %v5296_v37 }
 0x313   :  { %v7164_v33 = vpop.f32.mrb[22].mxu0  ;;  %v7500_v6 = vpop.f32.mrb[22].mxu1 }
 0x314   :  { %4051 = vst [vmem:[#allocation7 + $0x138] sm:$0xff] %v7164_v33  ;;  %5373 = vst [vmem:[#allocation7 + $0x1b8] sm:$0xff] %v7500_v6  ;;  %v3986_v62 = vpop.f32.mrb[23].mxu0  ;;  %v5308_v2 = vpop.f32.mrb[23].mxu1 }
 0x315   :  { %4050 = vst [vmem:[#allocation7 + $0x130] sm:$0xff] %v3986_v62  ;;  %5372 = vst [vmem:[#allocation7 + $0x1b0] sm:$0xff] %v5308_v2 }
 0x317   :  { %v7167_v10 = vpop.f32.mrb[24].mxu0  ;;  %v7503_v39 = vpop.f32.mrb[24].mxu1 }
 0x318   :  { %4053 = vst [vmem:[#allocation7 + $0x148] sm:$0xff] %v7167_v10  ;;  %5375 = vst [vmem:[#allocation7 + $0x1c8] sm:$0xff] %v7503_v39  ;;  %v3998_v41 = vpop.f32.mrb[25].mxu0  ;;  %v5320_v36 = vpop.f32.mrb[25].mxu1 }
 0x319   :  { %4052 = vst [vmem:[#allocation7 + $0x140] sm:$0xff] %v3998_v41  ;;  %5374 = vst [vmem:[#allocation7 + $0x1c0] sm:$0xff] %v5320_v36 }
 0x31b   :  { %v7170_v26 = vpop.f32.mrb[26].mxu0  ;;  %v7506_v22 = vpop.f32.mrb[26].mxu1 }
 0x31c   :  { %4055 = vst [vmem:[#allocation7 + $0x158] sm:$0xff] %v7170_v26  ;;  %5377 = vst [vmem:[#allocation7 + $0x1d8] sm:$0xff] %v7506_v22  ;;  %v4010_v59 = vpop.f32.mrb[27].mxu0  ;;  %v5332_v27 = vpop.f32.mrb[27].mxu1 }
 0x31d   :  { %4054 = vst [vmem:[#allocation7 + $0x150] sm:$0xff] %v4010_v59  ;;  %5376 = vst [vmem:[#allocation7 + $0x1d0] sm:$0xff] %v5332_v27 }
 0x31f   :  { %v7173_v42 = vpop.f32.mrb[28].mxu0  ;;  %v7509_v54 = vpop.f32.mrb[28].mxu1 }
 0x320   :  { %4057 = vst [vmem:[#allocation7 + $0x168] sm:$0xff] %v7173_v42  ;;  %5379 = vst [vmem:[#allocation7 + $0x1e8] sm:$0xff] %v7509_v54  ;;  %v4022_v32 = vpop.f32.mrb[29].mxu0  ;;  %v5344_v50 = vpop.f32.mrb[29].mxu1 }
 0x321   :  { %4056 = vst [vmem:[#allocation7 + $0x160] sm:$0xff] %v4022_v32  ;;  %5378 = vst [vmem:[#allocation7 + $0x1e0] sm:$0xff] %v5344_v50 }
 0x323   :  { %v7176_v3 = vpop.f32.mrb[30].mxu0  ;;  %v7512_v34 = vpop.f32.mrb[30].mxu1 }
 0x324   :  { %4059 = vst [vmem:[#allocation7 + $0x178] sm:$0xff] %v7176_v3  ;;  %5381 = vst [vmem:[#allocation7 + $0x1f8] sm:$0xff] %v7512_v34  ;;  %v4034_v0 = vpop.f32.mrb[31].mxu0  ;;  %v5356_v45 = vpop.f32.mrb[31].mxu1 }
 0x325   :  { %4058 = vst [vmem:[#allocation7 + $0x170] sm:$0xff] %v4034_v0  ;;  %5380 = vst [vmem:[#allocation7 + $0x1f0] sm:$0xff] %v5356_v45 }
 0x326   :  { %8665 = shalt.err (!%p8662_p6)
}
 0x327   :  { %s8666_s20 = scalar_lea.hbm %s10749_s4, 8192 }
 0x328   :  { %p8667_p7 = scmp.ne.s32.totalorder %s10749_s4, %s8666_s20  ;;  %p8670_p8 = scmp.lt.u32.totalorder %s8666_s20, %s10749_s4 }
 0x32a   :  { %p8672_p9 = pnand %p8670_p8, %p8667_p7 }
 0x32c   :  { %8675 = shalt.err (!%p8672_p9)
}
 0x32d   :  { %5393 = dma.vmem_to_hbm [thread:$0]  %s5388_s16, 8192, %s10749_s4, [#allocation4], %s8683_s25, %s8683_s25, %s8684_s26  }
 0x32e   :  { %8680 = dma.done.wait [#allocation4], 8192  }
 0x32f   :  { %8681 = vsyncadd [#allocation4], 4294959104 }
 0x330   :  { %5397 = vsyncpa [#allocation3], 1 }
 0x331   :  { %5398 = vsyncpa [#allocation6], 1 }
 0x332   :  { %5399 = vsyncpa [#allocation4], 1 }

</bundles_post_ra>
